<compile_context>
chip_gen: v7x
topology: tpu7x:2x2x1
jax: 0.10.0
libtpu: 0.0.40
codegen_flags: <defaults>
</compile_context>

<pallas_src>
import math
from functools import partial

import jax
import jax.numpy as jnp
from jax.experimental import pallas as pl
from jax.experimental.pallas import tpu as pltpu

_HP = 128  # head axis is padded (zero-filled) to one full lane group


def _layernorm(x, w, b, eps):
    """Row-wise LayerNorm over the last axis (matches nn.LayerNorm)."""
    mu = jnp.mean(x, axis=-1, keepdims=True)
    xc = x - mu
    var = jnp.mean(xc * xc, axis=-1, keepdims=True)
    return xc * jax.lax.rsqrt(var + eps) * w + b


def _gelu_tanh(x):
    # TODO(synk): nn.GELU defaults to the exact erf form; the tanh approximation is used
    # here (and in the in-script reference) to avoid relying on an erf lowering in Mosaic.
    c = math.sqrt(2.0 / math.pi)
    return 0.5 * x * (1.0 + jnp.tanh(c * (x + 0.044715 * x * x * x)))


# ----------------------- kernel 1: x-streaming class-attention context -----------------------
def _ca_context_kernel(x_ref, wn1_ref, bn1_ref, ws_ref, bs_ref, scls_ref,
                       wv_ref, bv_ref, vcls_ref, sexp_ref, out_ref,
                       *, bb, seq, dim, hp, dot_dtype):
    f32 = jnp.float32

    # norm1 over all bb*seq rows of this batch block (x may be streamed in bf16)
    xn = _layernorm(x_ref[...].astype(f32), wn1_ref[...], bn1_ref[...], 1e-6)   # (M, D)
    xd = xn.astype(dot_dtype)

    # V projection: the single dominant MXU matmul of the kernel
    v = jnp.dot(xd, wv_ref[...], preferred_element_type=f32) + bv_ref[...]      # (M, D)

    # per-head scores against the pre-scaled cls query, with W_k folded in:
    #   s = norm1(x) @ (W_k @ q_headmask) + b_k @ q_headmask
    s = jnp.dot(xd, ws_ref[...], preferred_element_type=f32) + bs_ref[...]      # (M, Hp)
    s3 = s.reshape(bb, seq, hp)
    scls = scls_ref[...].reshape(1, 1, hp)

    # numerically-stable softmax over the N+1 keys (N x-rows + the cls row)
    m = jnp.maximum(jnp.max(s3, axis=1, keepdims=True), scls)                   # (Bb, 1, Hp)
    p = jnp.exp(s3 - m)                                                         # (Bb, N, Hp)
    p_cls = jnp.exp(scls - m)                                                   # (Bb, 1, Hp)
    denom = jnp.sum(p, axis=1, keepdims=True) + p_cls
    inv = pl.reciprocal(denom, approx=False)       # exact: keeps parity with the reference
    attn_x = (p * inv).reshape(bb * seq, hp)                                    # (M, Hp)
    attn_c = (p_cls * inv).reshape(bb, hp)                                      # (Bb, Hp)

    # context: head -> channel expansion (MXU), weight V, reduce over keys
    sexp = sexp_ref[...]
    ax = jnp.dot(attn_x.astype(dot_dtype), sexp, preferred_element_type=f32)    # (M, D)
    ctx = jnp.sum((ax * v).reshape(bb, seq, dim), axis=1)                       # (Bb, D)
    ctx = ctx + jnp.dot(attn_c.astype(dot_dtype), sexp,
                        preferred_element_type=f32) * vcls_ref[...]             # cls K/V row
    out_ref[...] = ctx.astype(out_ref.dtype)


# ----------------------- kernel 2: cls-only tail (proj, MLP, final LN) -----------------------
def _cls_tail_kernel(ctx_ref, cls_ref, wp_ref, bp_ref, g1_ref,
                     wn2_ref, bn2_ref, wf1_ref, bf1_ref, wf2_ref, bf2_ref, g2_ref,
                     wn_ref, bn_ref, out_ref, *, dot_dtype):
    f32 = jnp.float32
    attn_out = jnp.dot(ctx_ref[...].astype(dot_dtype), wp_ref[...],
                       preferred_element_type=f32) + bp_ref[...]                # (Bt, D)
    cls1 = cls_ref[...] + g1_ref[...] * attn_out

    n2 = _layernorm(cls1, wn2_ref[...], bn2_ref[...], 1e-6)
    hid = jnp.dot(n2.astype(dot_dtype), wf1_ref[...],
                  preferred_element_type=f32) + bf1_ref[...]                    # (Bt, Dh)
    hid = _gelu_tanh(hid)
    mlp = jnp.dot(hid.astype(dot_dtype), wf2_ref[...],
                  preferred_element_type=f32) + bf2_ref[...]                    # (Bt, D)
    cls2 = cls1 + g2_ref[...] * mlp

    # CAPooling epilogue: LayerNorm(cat(cls, x))[:, 0] == LayerNorm of the cls row
    out_ref[...] = _layernorm(cls2, wn_ref[...], bn_ref[...], 1e-5).astype(out_ref.dtype)


# ------------------------------------ wrapper helpers ------------------------------------
def _fixed(shape):
    """Grid-invariant input: constant index_map + single buffering (the tile never
    changes across grid steps, so a second pipeline buffer is pure VMEM waste)."""
    idx = lambda *_: (0,) * len(shape)
    if hasattr(pl, "Buffered"):
        return pl.BlockSpec(shape, idx, pipeline_mode=pl.Buffered(1))
    return pl.BlockSpec(shape, idx)


def _pick_rows(total, row_bytes, *, vmem_budget_bytes, min_steps=1):
    """Largest 8-aligned divisor of `total` whose per-step working set fits the budget,
    keeping at least `min_steps` grid steps (and preferring an even step count when
    min_steps >= 2 so both v7x TensorCores get balanced work)."""
    cap = max(8, vmem_budget_bytes // max(row_bytes, 1))
    cands = [r for r in range(8, total + 1, 8) if total % r == 0]
    if not cands:
        return total                  # no 8-aligned divisor: one full-array block is legal
    for need_even in ((True, False) if min_steps >= 2 else (False,)):
        fit = [r for r in cands
               if r <= cap and total // r >= min_steps
               and (not need_even or (total // r) % 2 == 0)]
        if fit:
            return max(fit)
    ok = [r for r in cands if total // r >= min_steps] or cands
    return min(ok)


def ca_pooling(x, params, *, num_heads, dot_dtype=jnp.bfloat16, x_stream_dtype=None,
               vmem_limit_bytes=40 * 1024 * 1024, min_grid_steps=1):
    """CAPooling.forward(x) with the default cls_token — returns (B, D).

    dot_dtype        : MXU operand dtype; bf16 (default) is the native fast path on
                       v5e/v6e/v7x (accumulation stays f32). Use jnp.float32 for exact
                       parity with an f32 reference.
    x_stream_dtype   : optionally stream x from HBM in this dtype (e.g. bf16 halves the
                       dominant HBM stream; norm1 still runs in f32 inside the kernel).
    vmem_limit_bytes : scoped-VMEM cap. 32-40 MiB is safe on v7x (64 MiB physical); on
                       single-core v5e/v6e it can be raised to 64-96 MiB for bigger blocks.
    min_grid_steps   : set to 2 on v7x so the ("parallel",) batch grid feeds both
                       TensorCores; leave at 1 on single-core v5e/v6e.
    """
    B, N, D = x.shape
    H = num_heads
    assert D % H == 0
    dh = D // H
    scale = dh ** (-0.5)
    Dh = params["w_fc1"].shape[1]
    f32 = jnp.float32
    cast = lambda a: a.astype(dot_dtype)

    # TODO(synk): only the iterations=1 / cls=None / dropout=0 CAPooling path is wired.

    # ---- batch-invariant cls-row precompute (tiny wrapper glue, all f32) -----------------
    cls = params["cls_token"].reshape(1, D).astype(f32)
    cls_n = _layernorm(cls, params["w_n1"], params["b_n1"], 1e-6)
    q0 = (cls_n @ params["w_q"] + params["b_q"]) * scale          # (1, D) pre-scaled cls q
    k_cls = cls_n @ params["w_k"] + params["b_k"]                 # (1, D)
    v_cls = cls_n @ params["w_v"] + params["b_v"]                 # (1, D)

    head_of = jnp.arange(D, dtype=jnp.int32) // dh                # channel -> head id
    hmask = (head_of[:, None] == jnp.arange(H, dtype=jnp.int32)[None, :]).astype(f32)  # (D,H)
    qh = q0.reshape(D, 1) * hmask                                 # (D, H) head-masked cls q
    w_s = params["w_k"] @ qh                                      # (D, H)  W_k folded in
    b_s = params["b_k"] @ qh                                      # (1, H)
    s_cls = (q0 * k_cls) @ hmask                                  # (1, H)  cls-key score

    hp = -(-H // _HP) * _HP                                       # pad heads -> full lanes
    pad = [(0, 0), (0, hp - H)]
    w_s = jnp.pad(w_s, pad)
    b_s = jnp.pad(b_s, pad)
    s_cls = jnp.pad(s_cls, pad)
    sexp = jnp.pad(hmask.T, [(0, hp - H), (0, 0)])                # (Hp, D) head->channel 0/1

    # ---- pre-cast MXU operands ONCE in the wrapper (no-op when dot_dtype == f32) ---------
    w_s_c, sexp_c, w_v_c = cast(w_s), cast(sexp), cast(params["w_v"])
    w_p_c, w_f1_c, w_f2_c = cast(params["w_proj"]), cast(params["w_fc1"]), cast(params["w_fc2"])

    x2d = x.reshape(B * N, D)          # no (B, N+1, D) cls-concat is ever built in HBM
    if x_stream_dtype is not None:
        x2d = x2d.astype(x_stream_dtype)

    # ---- kernel 1: class-attention context over the x rows -------------------------------
    x_bytes = jnp.dtype(x2d.dtype).itemsize
    row_bytes = N * (2 * D * x_bytes + 6 * D * 4 + 4 * hp * 4)    # rough f32 working set / batch elem
    bb = _pick_rows(B, row_bytes,
                    vmem_budget_bytes=int(vmem_limit_bytes * 0.55),
                    min_steps=min_grid_steps)

    ctx = pl.pallas_call(
        partial(_ca_context_kernel, bb=bb, seq=N, dim=D, hp=hp, dot_dtype=dot_dtype),
        out_shape=jax.ShapeDtypeStruct((B, D), f32),
        grid=(B // bb,),
        in_specs=[
            pl.BlockSpec((bb * N, D), lambda i: (i, 0)),   # x rows of this batch block
            _fixed((1, D)), _fixed((1, D)),                # norm1 w/b
            _fixed((D, hp)), _fixed((1, hp)),              # folded score projection w/b
            _fixed((1, hp)),                               # per-head score of the cls key
            _fixed((D, D)), _fixed((1, D)),                # V projection w/b
            _fixed((1, D)),                                # v of the cls row
            _fixed((hp, D)),                               # head -> channel expansion
        ],
        out_specs=pl.BlockSpec((bb, D), lambda i: (i, 0)),  # lane/sublane-dense (Bb, D) slab
        compiler_params=pltpu.CompilerParams(
            dimension_semantics=("parallel",),
            vmem_limit_bytes=vmem_limit_bytes),
    )(x2d, params["w_n1"], params["b_n1"], w_s_c, b_s, s_cls,
      w_v_c, params["b_v"], v_cls, sexp_c)

    # ---- kernel 2: cls-only tail once over the whole batch -------------------------------
    tail_row_bytes = (5 * D + 3 * Dh) * 4
    tail_wbytes = (D * D + 2 * D * Dh) * jnp.dtype(dot_dtype).itemsize
    bt = _pick_rows(B, tail_row_bytes,
                    vmem_budget_bytes=max(1 << 20, int(vmem_limit_bytes * 0.55) - tail_wbytes),
                    min_steps=min_grid_steps)

    out = pl.pallas_call(
        partial(_cls_tail_kernel, dot_dtype=dot_dtype),
        out_shape=jax.ShapeDtypeStruct((B, D), f32),
        grid=(B // bt,),
        in_specs=[
            pl.BlockSpec((bt, D), lambda i: (i, 0)),       # ctx rows of this batch block
            _fixed((1, D)),                                # cls token (residual base)
            _fixed((D, D)), _fixed((1, D)),                # attention output proj w/b
            _fixed((1, D)),                                # gamma_1
            _fixed((1, D)), _fixed((1, D)),                # norm2 w/b
            _fixed((D, Dh)), _fixed((1, Dh)),              # fc1 w/b
            _fixed((Dh, D)), _fixed((1, D)),               # fc2 w/b
            _fixed((1, D)),                                # gamma_2
            _fixed((1, D)), _fixed((1, D)),                # final LayerNorm w/b
        ],
        out_specs=pl.BlockSpec((bt, D), lambda i: (i, 0)),
        compiler_params=pltpu.CompilerParams(
            dimension_semantics=("parallel",),
            vmem_limit_bytes=vmem_limit_bytes),
    )(ctx, cls, w_p_c, params["b_proj"], params["gamma_1"],
      params["w_n2"], params["b_n2"], w_f1_c, params["b_fc1"],
      w_f2_c, params["b_fc2"], params["gamma_2"],
      params["w_norm"], params["b_norm"])
    return out


# ------------------------------------ params & reference ------------------------------------
def init_params(key, d_model, *, mlp_ratio=4.0, init_scale=1e-5):
    """Deterministic synthetic parameters with CAPooling's shapes.
    Linear weights are stored as (in, out); row vectors as (1, X)."""
    hidden = int(d_model * mlp_ratio)
    ks = jax.random.split(key, 16)
    s = 0.02
    n = lambda k, shp: s * jax.random.normal(k, shp, jnp.float32)
    ones = lambda: jnp.ones((1, d_model), jnp.float32)
    return {
        "cls_token": n(ks[0], (d_model,)),
        "w_q": n(ks[1], (d_model, d_model)), "b_q": n(ks[2], (1, d_model)),
        "w_k": n(ks[3], (d_model, d_model)), "b_k": n(ks[4], (1, d_model)),
        "w_v": n(ks[5], (d_model, d_model)), "b_v": n(ks[6], (1, d_model)),
        "w_proj": n(ks[7], (d_model, d_model)), "b_proj": n(ks[8], (1, d_model)),
        "w_n1": ones() + n(ks[9], (1, d_model)), "b_n1": n(ks[10], (1, d_model)),
        "w_n2": ones() + n(ks[11], (1, d_model)), "b_n2": n(ks[12], (1, d_model)),
        "gamma_1": init_scale * jnp.ones((1, d_model), jnp.float32),
        "gamma_2": init_scale * jnp.ones((1, d_model), jnp.float32),
        "w_fc1": n(ks[13], (d_model, hidden)), "b_fc1": n(ks[14], (1, hidden)),
        "w_fc2": n(ks[15], (hidden, d_model)),
        "b_fc2": jnp.zeros((1, d_model), jnp.float32),
        "w_norm": jnp.ones((1, d_model), jnp.float32),
        "b_norm": jnp.zeros((1, d_model), jnp.float32),
    }


def ca_pooling_reference(x, params, *, num_heads):
    """Pure-JAX replica of CAPooling.forward (iterations=1, cls=None, dropouts=0)."""
    mm = partial(jnp.matmul, precision=jax.lax.Precision.HIGHEST)   # full-f32 reference
    B, N, D = x.shape
    dh = D // num_heads
    scale = dh ** (-0.5)
    cls = jnp.broadcast_to(params["cls_token"].reshape(1, 1, D), (B, 1, D))

    # LayerScale_Block_CA
    u = jnp.concatenate([cls, x], axis=1)                                   # (B, N+1, D)
    un = _layernorm(u, params["w_n1"], params["b_n1"], 1e-6)
    q = (mm(un[:, 0], params["w_q"]) + params["b_q"]) * scale               # (B, D)
    k = mm(un, params["w_k"]) + params["b_k"]                               # (B, N+1, D)
    v = mm(un, params["w_v"]) + params["b_v"]
    qh = q.reshape(B, 1, num_heads, dh).transpose(0, 2, 1, 3)               # (B, H, 1, dh)
    kh = k.reshape(B, N + 1, num_heads, dh).transpose(0, 2, 1, 3)           # (B, H, N+1, dh)
    vh = v.reshape(B, N + 1, num_heads, dh).transpose(0, 2, 1, 3)
    attn = jax.nn.softmax(mm(qh, kh.transpose(0, 1, 3, 2)), axis=-1)        # (B, H, 1, N+1)
    ctx = mm(attn, vh).transpose(0, 2, 1, 3).reshape(B, 1, D)
    attn_out = mm(ctx, params["w_proj"]) + params["b_proj"]
    cls1 = cls + params["gamma_1"] * attn_out
    n2 = _layernorm(cls1, params["w_n2"], params["b_n2"], 1e-6)
    mlp = mm(_gelu_tanh(mm(n2, params["w_fc1"]) + params["b_fc1"]),
             params["w_fc2"]) + params["b_fc2"]
    cls2 = cls1 + params["gamma_2"] * mlp

    # CAPooling epilogue
    full = jnp.concatenate([cls2, x], axis=1)
    full = _layernorm(full, params["w_norm"], params["b_norm"], 1e-5)
    return full[:, 0]


if __name__ == "__main__":
    B, N, d_model, num_heads = 16, 8, 64, 4          # d_head=16, mlp hidden=256

    key = jax.random.PRNGKey(0)
    kx, kp = jax.random.split(key)
    x = jax.random.normal(kx, (B, N, d_model), jnp.float32)
    # init_scale=0.1 (module default is 1e-5) so the attention/MLP branches are numerically
    # visible in the correctness check; the computation is unchanged.
    params = init_params(kp, d_model, mlp_ratio=4.0, init_scale=0.1)

    ref = ca_pooling_reference(x, params, num_heads=num_heads)

    # f32 MXU-operand path: tight parity with the reference.
    f32_fn = jax.jit(partial(ca_pooling, num_heads=num_heads, dot_dtype=jnp.float32))
    out_f32 = jax.block_until_ready(f32_fn(x, params))
    assert out_f32.shape == (B, d_model)
    err32 = float(jnp.max(jnp.abs(out_f32 - ref)))
    assert jnp.allclose(out_f32, ref, atol=5e-3, rtol=5e-3), f"f32 mismatch (max abs err {err32})"

    # default bf16 MXU-operand fast path (+ bf16 x stream); looser tolerance is the expected
    # operand-rounding loss of the fast path, not a bug.
    bf16_fn = jax.jit(partial(ca_pooling, num_heads=num_heads,
                              dot_dtype=jnp.bfloat16, x_stream_dtype=jnp.bfloat16))
    out_bf16 = jax.block_until_ready(bf16_fn(x, params))
    assert out_bf16.shape == (B, d_model)
    errbf = float(jnp.max(jnp.abs(out_bf16 - ref)))
    assert jnp.allclose(out_bf16, ref, atol=3e-2, rtol=3e-2), f"bf16 mismatch (max abs err {errbf})"

    print("KERNEL_OK")
</pallas_src>

<mosaic_0001>
module attributes {stable_mosaic.version = 11 : i64} {
  func.func @_ca_context_kernel(%arg0: i32, %arg1: memref<128x64xf32, #tpu.memory_space<vmem>>, %arg2: memref<1x64xf32, #tpu.memory_space<vmem>>, %arg3: memref<1x64xf32, #tpu.memory_space<vmem>>, %arg4: memref<64x128xf32, #tpu.memory_space<vmem>>, %arg5: memref<1x128xf32, #tpu.memory_space<vmem>>, %arg6: memref<1x128xf32, #tpu.memory_space<vmem>>, %arg7: memref<64x64xf32, #tpu.memory_space<vmem>>, %arg8: memref<1x64xf32, #tpu.memory_space<vmem>>, %arg9: memref<1x64xf32, #tpu.memory_space<vmem>>, %arg10: memref<128x64xf32, #tpu.memory_space<vmem>>, %arg11: memref<16x64xf32, #tpu.memory_space<vmem>>) attributes {dimension_semantics = [#tpu.dimension_semantics<parallel>], iteration_bounds = array<i64: 1>, scalar_prefetch = 0 : i64, scratch_operands = 0 : i64, tpu.core_type = #tpu.core_type<tc>, window_params = [{transform_indices = @transform_0, window_bounds = array<i64: 128, 64>}, {pipeline_mode = #tpu.pipeline_mode<synchronous>, transform_indices = @transform_1, window_bounds = array<i64: 1, 64>}, {pipeline_mode = #tpu.pipeline_mode<synchronous>, transform_indices = @transform_2, window_bounds = array<i64: 1, 64>}, {pipeline_mode = #tpu.pipeline_mode<synchronous>, transform_indices = @transform_3, window_bounds = array<i64: 64, 128>}, {pipeline_mode = #tpu.pipeline_mode<synchronous>, transform_indices = @transform_4, window_bounds = array<i64: 1, 128>}, {pipeline_mode = #tpu.pipeline_mode<synchronous>, transform_indices = @transform_5, window_bounds = array<i64: 1, 128>}, {pipeline_mode = #tpu.pipeline_mode<synchronous>, transform_indices = @transform_6, window_bounds = array<i64: 64, 64>}, {pipeline_mode = #tpu.pipeline_mode<synchronous>, transform_indices = @transform_7, window_bounds = array<i64: 1, 64>}, {pipeline_mode = #tpu.pipeline_mode<synchronous>, transform_indices = @transform_8, window_bounds = array<i64: 1, 64>}, {pipeline_mode = #tpu.pipeline_mode<synchronous>, transform_indices = @transform_9, window_bounds = array<i64: 128, 64>}, {transform_indices = @transform_10, window_bounds = array<i64: 16, 64>}]} {
    %c0 = arith.constant 0 : index
    %c0_0 = arith.constant 0 : index
    %0 = vector.load %arg1[%c0, %c0_0] : memref<128x64xf32, #tpu.memory_space<vmem>>, vector<128x64xf32>
    %c0_1 = arith.constant 0 : index
    %c0_2 = arith.constant 0 : index
    %1 = vector.load %arg2[%c0_1, %c0_2] : memref<1x64xf32, #tpu.memory_space<vmem>>, vector<1x64xf32>
    %c0_3 = arith.constant 0 : index
    %c0_4 = arith.constant 0 : index
    %2 = vector.load %arg3[%c0_3, %c0_4] : memref<1x64xf32, #tpu.memory_space<vmem>>, vector<1x64xf32>
    %cst = arith.constant dense<0.000000e+00> : vector<128xf32>
    %3 = vector.multi_reduction <add>, %0, %cst [1] : vector<128x64xf32> to vector<128xf32>
    %4 = vector.shape_cast %3 : vector<128xf32> to vector<128x1xf32>
    %cst_5 = arith.constant 6.400000e+01 : f32
    %5 = vector.broadcast %cst_5 : f32 to vector<128x1xf32>
    %6 = arith.divf %4, %5 : vector<128x1xf32>
    %7 = vector.broadcast %6 : vector<128x1xf32> to vector<128x64xf32>
    %8 = arith.subf %0, %7 : vector<128x64xf32>
    %9 = arith.mulf %8, %8 : vector<128x64xf32>
    %cst_6 = arith.constant dense<0.000000e+00> : vector<128xf32>
    %10 = vector.multi_reduction <add>, %9, %cst_6 [1] : vector<128x64xf32> to vector<128xf32>
    %11 = vector.shape_cast %10 : vector<128xf32> to vector<128x1xf32>
    %cst_7 = arith.constant 6.400000e+01 : f32
    %12 = vector.broadcast %cst_7 : f32 to vector<128x1xf32>
    %13 = arith.divf %11, %12 : vector<128x1xf32>
    %cst_8 = arith.constant 9.99999997E-7 : f32
    %14 = vector.broadcast %cst_8 : f32 to vector<128x1xf32>
    %15 = arith.addf %13, %14 : vector<128x1xf32>
    %16 = math.rsqrt %15 : vector<128x1xf32>
    %17 = vector.broadcast %16 : vector<128x1xf32> to vector<128x64xf32>
    %18 = arith.mulf %8, %17 : vector<128x64xf32>
    %19 = vector.broadcast %1 : vector<1x64xf32> to vector<128x64xf32>
    %20 = arith.mulf %18, %19 : vector<128x64xf32>
    %21 = vector.broadcast %2 : vector<1x64xf32> to vector<128x64xf32>
    %22 = arith.addf %20, %21 : vector<128x64xf32>
    %c0_9 = arith.constant 0 : index
    %c0_10 = arith.constant 0 : index
    %23 = vector.load %arg7[%c0_9, %c0_10] : memref<64x64xf32, #tpu.memory_space<vmem>>, vector<64x64xf32>
    %cst_11 = arith.constant dense<0.000000e+00> : vector<128x64xf32>
    %24 = tpu.matmul %22, %23, %cst_11 {dimension_numbers = #tpu.dot_dimension_numbers<[1], [0], [0], [1], [0, 0, 1, 1], [], []>} : vector<128x64xf32>, vector<64x64xf32>, vector<128x64xf32> -> vector<128x64xf32>
    %c0_12 = arith.constant 0 : index
    %c0_13 = arith.constant 0 : index
    %25 = vector.load %arg8[%c0_12, %c0_13] : memref<1x64xf32, #tpu.memory_space<vmem>>, vector<1x64xf32>
    %26 = vector.broadcast %25 : vector<1x64xf32> to vector<128x64xf32>
    %27 = arith.addf %24, %26 : vector<128x64xf32>
    %c0_14 = arith.constant 0 : index
    %c0_15 = arith.constant 0 : index
    %28 = vector.load %arg4[%c0_14, %c0_15] : memref<64x128xf32, #tpu.memory_space<vmem>>, vector<64x128xf32>
    %cst_16 = arith.constant dense<0.000000e+00> : vector<128x128xf32>
    %29 = tpu.matmul %22, %28, %cst_16 {dimension_numbers = #tpu.dot_dimension_numbers<[1], [0], [0], [1], [0, 0, 1, 1], [], []>} : vector<128x64xf32>, vector<64x128xf32>, vector<128x128xf32> -> vector<128x128xf32>
    %c0_17 = arith.constant 0 : index
    %c0_18 = arith.constant 0 : index
    %30 = vector.load %arg5[%c0_17, %c0_18] : memref<1x128xf32, #tpu.memory_space<vmem>>, vector<1x128xf32>
    %31 = vector.broadcast %30 : vector<1x128xf32> to vector<128x128xf32>
    %32 = arith.addf %29, %31 : vector<128x128xf32>
    %33 = vector.shape_cast %32 : vector<128x128xf32> to vector<16x8x128xf32>
    %c0_19 = arith.constant 0 : index
    %c0_20 = arith.constant 0 : index
    %34 = vector.load %arg6[%c0_19, %c0_20] : memref<1x128xf32, #tpu.memory_space<vmem>>, vector<1x128xf32>
    %35 = vector.shape_cast %34 : vector<1x128xf32> to vector<1x1x128xf32>
    %cst_21 = arith.constant dense<0xFF800000> : vector<16x128xf32>
    %36 = vector.multi_reduction <maximumf>, %33, %cst_21 [1] : vector<16x8x128xf32> to vector<16x128xf32>
    %37 = vector.shape_cast %36 : vector<16x128xf32> to vector<16x1x128xf32>
    %38 = vector.broadcast %35 : vector<1x1x128xf32> to vector<16x1x128xf32>
    %39 = arith.maximumf %37, %38 : vector<16x1x128xf32>
    %40 = vector.broadcast %39 : vector<16x1x128xf32> to vector<16x8x128xf32>
    %41 = arith.subf %33, %40 : vector<16x8x128xf32>
    %42 = math.exp %41 : vector<16x8x128xf32>
    %43 = vector.broadcast %35 : vector<1x1x128xf32> to vector<16x1x128xf32>
    %44 = arith.subf %43, %39 : vector<16x1x128xf32>
    %45 = math.exp %44 : vector<16x1x128xf32>
    %cst_22 = arith.constant dense<0.000000e+00> : vector<16x128xf32>
    %46 = vector.multi_reduction <add>, %42, %cst_22 [1] : vector<16x8x128xf32> to vector<16x128xf32>
    %47 = vector.shape_cast %46 : vector<16x128xf32> to vector<16x1x128xf32>
    %48 = arith.addf %47, %45 : vector<16x1x128xf32>
    %49 = tpu.reciprocal %48 : vector<16x1x128xf32> -> vector<16x1x128xf32>
    %50 = vector.broadcast %49 : vector<16x1x128xf32> to vector<16x8x128xf32>
    %51 = arith.mulf %42, %50 : vector<16x8x128xf32>
    %52 = vector.shape_cast %51 : vector<16x8x128xf32> to vector<128x128xf32>
    %53 = arith.mulf %45, %49 : vector<16x1x128xf32>
    %54 = vector.shape_cast %53 : vector<16x1x128xf32> to vector<16x128xf32>
    %c0_23 = arith.constant 0 : index
    %c0_24 = arith.constant 0 : index
    %55 = vector.load %arg10[%c0_23, %c0_24] : memref<128x64xf32, #tpu.memory_space<vmem>>, vector<128x64xf32>
    %cst_25 = arith.constant dense<0.000000e+00> : vector<128x64xf32>
    %56 = tpu.matmul %52, %55, %cst_25 {dimension_numbers = #tpu.dot_dimension_numbers<[1], [0], [0], [1], [0, 0, 1, 1], [], []>} : vector<128x128xf32>, vector<128x64xf32>, vector<128x64xf32> -> vector<128x64xf32>
    %57 = arith.mulf %56, %27 : vector<128x64xf32>
    %58 = vector.shape_cast %57 : vector<128x64xf32> to vector<16x8x64xf32>
    %cst_26 = arith.constant dense<0.000000e+00> : vector<16x64xf32>
    %59 = vector.multi_reduction <add>, %58, %cst_26 [1] : vector<16x8x64xf32> to vector<16x64xf32>
    %cst_27 = arith.constant dense<0.000000e+00> : vector<16x64xf32>
    %60 = tpu.matmul %54, %55, %cst_27 {dimension_numbers = #tpu.dot_dimension_numbers<[1], [0], [0], [1], [0, 0, 1, 1], [], []>} : vector<16x128xf32>, vector<128x64xf32>, vector<16x64xf32> -> vector<16x64xf32>
    %c0_28 = arith.constant 0 : index
    %c0_29 = arith.constant 0 : index
    %61 = vector.load %arg9[%c0_28, %c0_29] : memref<1x64xf32, #tpu.memory_space<vmem>>, vector<1x64xf32>
    %62 = vector.broadcast %61 : vector<1x64xf32> to vector<16x64xf32>
    %63 = arith.mulf %60, %62 : vector<16x64xf32>
    %64 = arith.addf %59, %63 : vector<16x64xf32>
    %c0_30 = arith.constant 0 : index
    %c0_31 = arith.constant 0 : index
    %65 = vector.load %arg11[%c0_30, %c0_31] : memref<16x64xf32, #tpu.memory_space<vmem>>, vector<16x64xf32>
    tpu.vector_store %arg11[%c0_30, %c0_31], %64 {strides = array<i32>} : memref<16x64xf32, #tpu.memory_space<vmem>>, vector<16x64xf32>,
    return
  }
  func.func @transform_0(%arg0: i32) -> (i32, i32) {
    %c0_i32 = arith.constant 0 : i32
    %c0_i32_0 = arith.constant 0 : i32
    return %arg0, %c0_i32 : i32, i32
  }
  func.func @transform_1(%arg0: i32) -> (i32, i32) {
    %c0_i32 = arith.constant 0 : i32
    %c0_i32_0 = arith.constant 0 : i32
    %c0_i32_1 = arith.constant 0 : i32
    return %c0_i32, %c0_i32_0 : i32, i32
  }
  func.func @transform_2(%arg0: i32) -> (i32, i32) {
    %c0_i32 = arith.constant 0 : i32
    %c0_i32_0 = arith.constant 0 : i32
    %c0_i32_1 = arith.constant 0 : i32
    return %c0_i32, %c0_i32_0 : i32, i32
  }
  func.func @transform_3(%arg0: i32) -> (i32, i32) {
    %c0_i32 = arith.constant 0 : i32
    %c0_i32_0 = arith.constant 0 : i32
    %c0_i32_1 = arith.constant 0 : i32
    return %c0_i32, %c0_i32_0 : i32, i32
  }
  func.func @transform_4(%arg0: i32) -> (i32, i32) {
    %c0_i32 = arith.constant 0 : i32
    %c0_i32_0 = arith.constant 0 : i32
    %c0_i32_1 = arith.constant 0 : i32
    return %c0_i32, %c0_i32_0 : i32, i32
  }
  func.func @transform_5(%arg0: i32) -> (i32, i32) {
    %c0_i32 = arith.constant 0 : i32
    %c0_i32_0 = arith.constant 0 : i32
    %c0_i32_1 = arith.constant 0 : i32
    return %c0_i32, %c0_i32_0 : i32, i32
  }
  func.func @transform_6(%arg0: i32) -> (i32, i32) {
    %c0_i32 = arith.constant 0 : i32
    %c0_i32_0 = arith.constant 0 : i32
    %c0_i32_1 = arith.constant 0 : i32
    return %c0_i32, %c0_i32_0 : i32, i32
  }
  func.func @transform_7(%arg0: i32) -> (i32, i32) {
    %c0_i32 = arith.constant 0 : i32
    %c0_i32_0 = arith.constant 0 : i32
    %c0_i32_1 = arith.constant 0 : i32
    return %c0_i32, %c0_i32_0 : i32, i32
  }
  func.func @transform_8(%arg0: i32) -> (i32, i32) {
    %c0_i32 = arith.constant 0 : i32
    %c0_i32_0 = arith.constant 0 : i32
    %c0_i32_1 = arith.constant 0 : i32
    return %c0_i32, %c0_i32_0 : i32, i32
  }
  func.func @transform_9(%arg0: i32) -> (i32, i32) {
    %c0_i32 = arith.constant 0 : i32
    %c0_i32_0 = arith.constant 0 : i32
    %c0_i32_1 = arith.constant 0 : i32
    return %c0_i32, %c0_i32_0 : i32, i32
  }
  func.func @transform_10(%arg0: i32) -> (i32, i32) {
    %c0_i32 = arith.constant 0 : i32
    %c0_i32_0 = arith.constant 0 : i32
    return %arg0, %c0_i32 : i32, i32
  }
}

module attributes {stable_mosaic.version = 11 : i64} {
  func.func @_cls_tail_kernel(%arg0: i32, %arg1: memref<16x64xf32, #tpu.memory_space<vmem>>, %arg2: memref<1x64xf32, #tpu.memory_space<vmem>>, %arg3: memref<64x64xf32, #tpu.memory_space<vmem>>, %arg4: memref<1x64xf32, #tpu.memory_space<vmem>>, %arg5: memref<1x64xf32, #tpu.memory_space<vmem>>, %arg6: memref<1x64xf32, #tpu.memory_space<vmem>>, %arg7: memref<1x64xf32, #tpu.memory_space<vmem>>, %arg8: memref<64x256xf32, #tpu.memory_space<vmem>>, %arg9: memref<1x256xf32, #tpu.memory_space<vmem>>, %arg10: memref<256x64xf32, #tpu.memory_space<vmem>>, %arg11: memref<1x64xf32, #tpu.memory_space<vmem>>, %arg12: memref<1x64xf32, #tpu.memory_space<vmem>>, %arg13: memref<1x64xf32, #tpu.memory_space<vmem>>, %arg14: memref<1x64xf32, #tpu.memory_space<vmem>>, %arg15: memref<16x64xf32, #tpu.memory_space<vmem>>) attributes {dimension_semantics = [#tpu.dimension_semantics<parallel>], iteration_bounds = array<i64: 1>, scalar_prefetch = 0 : i64, scratch_operands = 0 : i64, tpu.core_type = #tpu.core_type<tc>, window_params = [{transform_indices = @transform_0, window_bounds = array<i64: 16, 64>}, {pipeline_mode = #tpu.pipeline_mode<synchronous>, transform_indices = @transform_1, window_bounds = array<i64: 1, 64>}, {pipeline_mode = #tpu.pipeline_mode<synchronous>, transform_indices = @transform_2, window_bounds = array<i64: 64, 64>}, {pipeline_mode = #tpu.pipeline_mode<synchronous>, transform_indices = @transform_3, window_bounds = array<i64: 1, 64>}, {pipeline_mode = #tpu.pipeline_mode<synchronous>, transform_indices = @transform_4, window_bounds = array<i64: 1, 64>}, {pipeline_mode = #tpu.pipeline_mode<synchronous>, transform_indices = @transform_5, window_bounds = array<i64: 1, 64>}, {pipeline_mode = #tpu.pipeline_mode<synchronous>, transform_indices = @transform_6, window_bounds = array<i64: 1, 64>}, {pipeline_mode = #tpu.pipeline_mode<synchronous>, transform_indices = @transform_7, window_bounds = array<i64: 64, 256>}, {pipeline_mode = #tpu.pipeline_mode<synchronous>, transform_indices = @transform_8, window_bounds = array<i64: 1, 256>}, {pipeline_mode = #tpu.pipeline_mode<synchronous>, transform_indices = @transform_9, window_bounds = array<i64: 256, 64>}, {pipeline_mode = #tpu.pipeline_mode<synchronous>, transform_indices = @transform_10, window_bounds = array<i64: 1, 64>}, {pipeline_mode = #tpu.pipeline_mode<synchronous>, transform_indices = @transform_11, window_bounds = array<i64: 1, 64>}, {pipeline_mode = #tpu.pipeline_mode<synchronous>, transform_indices = @transform_12, window_bounds = array<i64: 1, 64>}, {pipeline_mode = #tpu.pipeline_mode<synchronous>, transform_indices = @transform_13, window_bounds = array<i64: 1, 64>}, {transform_indices = @transform_14, window_bounds = array<i64: 16, 64>}]} {
    %c0 = arith.constant 0 : index
    %c0_0 = arith.constant 0 : index
    %0 = vector.load %arg1[%c0, %c0_0] : memref<16x64xf32, #tpu.memory_space<vmem>>, vector<16x64xf32>
    %c0_1 = arith.constant 0 : index
    %c0_2 = arith.constant 0 : index
    %1 = vector.load %arg3[%c0_1, %c0_2] : memref<64x64xf32, #tpu.memory_space<vmem>>, vector<64x64xf32>
    %cst = arith.constant dense<0.000000e+00> : vector<16x64xf32>
    %2 = tpu.matmul %0, %1, %cst {dimension_numbers = #tpu.dot_dimension_numbers<[1], [0], [0], [1], [0, 0, 1, 1], [], []>} : vector<16x64xf32>, vector<64x64xf32>, vector<16x64xf32> -> vector<16x64xf32>
    %c0_3 = arith.constant 0 : index
    %c0_4 = arith.constant 0 : index
    %3 = vector.load %arg4[%c0_3, %c0_4] : memref<1x64xf32, #tpu.memory_space<vmem>>, vector<1x64xf32>
    %4 = vector.broadcast %3 : vector<1x64xf32> to vector<16x64xf32>
    %5 = arith.addf %2, %4 : vector<16x64xf32>
    %c0_5 = arith.constant 0 : index
    %c0_6 = arith.constant 0 : index
    %6 = vector.load %arg2[%c0_5, %c0_6] : memref<1x64xf32, #tpu.memory_space<vmem>>, vector<1x64xf32>
    %c0_7 = arith.constant 0 : index
    %c0_8 = arith.constant 0 : index
    %7 = vector.load %arg5[%c0_7, %c0_8] : memref<1x64xf32, #tpu.memory_space<vmem>>, vector<1x64xf32>
    %8 = vector.broadcast %7 : vector<1x64xf32> to vector<16x64xf32>
    %9 = arith.mulf %8, %5 : vector<16x64xf32>
    %10 = vector.broadcast %6 : vector<1x64xf32> to vector<16x64xf32>
    %11 = arith.addf %10, %9 : vector<16x64xf32>
    %c0_9 = arith.constant 0 : index
    %c0_10 = arith.constant 0 : index
    %12 = vector.load %arg6[%c0_9, %c0_10] : memref<1x64xf32, #tpu.memory_space<vmem>>, vector<1x64xf32>
    %c0_11 = arith.constant 0 : index
    %c0_12 = arith.constant 0 : index
    %13 = vector.load %arg7[%c0_11, %c0_12] : memref<1x64xf32, #tpu.memory_space<vmem>>, vector<1x64xf32>
    %cst_13 = arith.constant dense<0.000000e+00> : vector<16xf32>
    %14 = vector.multi_reduction <add>, %11, %cst_13 [1] : vector<16x64xf32> to vector<16xf32>
    %15 = vector.shape_cast %14 : vector<16xf32> to vector<16x1xf32>
    %cst_14 = arith.constant 6.400000e+01 : f32
    %16 = vector.broadcast %cst_14 : f32 to vector<16x1xf32>
    %17 = arith.divf %15, %16 : vector<16x1xf32>
    %18 = vector.broadcast %17 : vector<16x1xf32> to vector<16x64xf32>
    %19 = arith.subf %11, %18 : vector<16x64xf32>
    %20 = arith.mulf %19, %19 : vector<16x64xf32>
    %cst_15 = arith.constant dense<0.000000e+00> : vector<16xf32>
    %21 = vector.multi_reduction <add>, %20, %cst_15 [1] : vector<16x64xf32> to vector<16xf32>
    %22 = vector.shape_cast %21 : vector<16xf32> to vector<16x1xf32>
    %cst_16 = arith.constant 6.400000e+01 : f32
    %23 = vector.broadcast %cst_16 : f32 to vector<16x1xf32>
    %24 = arith.divf %22, %23 : vector<16x1xf32>
    %cst_17 = arith.constant 9.99999997E-7 : f32
    %25 = vector.broadcast %cst_17 : f32 to vector<16x1xf32>
    %26 = arith.addf %24, %25 : vector<16x1xf32>
    %27 = math.rsqrt %26 : vector<16x1xf32>
    %28 = vector.broadcast %27 : vector<16x1xf32> to vector<16x64xf32>
    %29 = arith.mulf %19, %28 : vector<16x64xf32>
    %30 = vector.broadcast %12 : vector<1x64xf32> to vector<16x64xf32>
    %31 = arith.mulf %29, %30 : vector<16x64xf32>
    %32 = vector.broadcast %13 : vector<1x64xf32> to vector<16x64xf32>
    %33 = arith.addf %31, %32 : vector<16x64xf32>
    %c0_18 = arith.constant 0 : index
    %c0_19 = arith.constant 0 : index
    %34 = vector.load %arg8[%c0_18, %c0_19] : memref<64x256xf32, #tpu.memory_space<vmem>>, vector<64x256xf32>
    %cst_20 = arith.constant dense<0.000000e+00> : vector<16x256xf32>
    %35 = tpu.matmul %33, %34, %cst_20 {dimension_numbers = #tpu.dot_dimension_numbers<[1], [0], [0], [1], [0, 0, 1, 1], [], []>} : vector<16x64xf32>, vector<64x256xf32>, vector<16x256xf32> -> vector<16x256xf32>
    %c0_21 = arith.constant 0 : index
    %c0_22 = arith.constant 0 : index
    %36 = vector.load %arg9[%c0_21, %c0_22] : memref<1x256xf32, #tpu.memory_space<vmem>>, vector<1x256xf32>
    %37 = vector.broadcast %36 : vector<1x256xf32> to vector<16x256xf32>
    %38 = arith.addf %35, %37 : vector<16x256xf32>
    %cst_23 = arith.constant 5.000000e-01 : f32
    %39 = vector.broadcast %cst_23 : f32 to vector<16x256xf32>
    %40 = arith.mulf %39, %38 : vector<16x256xf32>
    %cst_24 = arith.constant 4.471500e-02 : f32
    %41 = vector.broadcast %cst_24 : f32 to vector<16x256xf32>
    %42 = arith.mulf %41, %38 : vector<16x256xf32>
    %43 = arith.mulf %42, %38 : vector<16x256xf32>
    %44 = arith.mulf %43, %38 : vector<16x256xf32>
    %45 = arith.addf %38, %44 : vector<16x256xf32>
    %cst_25 = arith.constant 0.797884583 : f32
    %46 = vector.broadcast %cst_25 : f32 to vector<16x256xf32>
    %47 = arith.mulf %46, %45 : vector<16x256xf32>
    %48 = math.tanh %47 : vector<16x256xf32>
    %cst_26 = arith.constant 1.000000e+00 : f32
    %49 = vector.broadcast %cst_26 : f32 to vector<16x256xf32>
    %50 = arith.addf %49, %48 : vector<16x256xf32>
    %51 = arith.mulf %40, %50 : vector<16x256xf32>
    %c0_27 = arith.constant 0 : index
    %c0_28 = arith.constant 0 : index
    %52 = vector.load %arg10[%c0_27, %c0_28] : memref<256x64xf32, #tpu.memory_space<vmem>>, vector<256x64xf32>
    %cst_29 = arith.constant dense<0.000000e+00> : vector<16x64xf32>
    %53 = tpu.matmul %51, %52, %cst_29 {dimension_numbers = #tpu.dot_dimension_numbers<[1], [0], [0], [1], [0, 0, 1, 1], [], []>} : vector<16x256xf32>, vector<256x64xf32>, vector<16x64xf32> -> vector<16x64xf32>
    %c0_30 = arith.constant 0 : index
    %c0_31 = arith.constant 0 : index
    %54 = vector.load %arg11[%c0_30, %c0_31] : memref<1x64xf32, #tpu.memory_space<vmem>>, vector<1x64xf32>
    %55 = vector.broadcast %54 : vector<1x64xf32> to vector<16x64xf32>
    %56 = arith.addf %53, %55 : vector<16x64xf32>
    %c0_32 = arith.constant 0 : index
    %c0_33 = arith.constant 0 : index
    %57 = vector.load %arg12[%c0_32, %c0_33] : memref<1x64xf32, #tpu.memory_space<vmem>>, vector<1x64xf32>
    %58 = vector.broadcast %57 : vector<1x64xf32> to vector<16x64xf32>
    %59 = arith.mulf %58, %56 : vector<16x64xf32>
    %60 = arith.addf %11, %59 : vector<16x64xf32>
    %c0_34 = arith.constant 0 : index
    %c0_35 = arith.constant 0 : index
    %61 = vector.load %arg13[%c0_34, %c0_35] : memref<1x64xf32, #tpu.memory_space<vmem>>, vector<1x64xf32>
    %c0_36 = arith.constant 0 : index
    %c0_37 = arith.constant 0 : index
    %62 = vector.load %arg14[%c0_36, %c0_37] : memref<1x64xf32, #tpu.memory_space<vmem>>, vector<1x64xf32>
    %cst_38 = arith.constant dense<0.000000e+00> : vector<16xf32>
    %63 = vector.multi_reduction <add>, %60, %cst_38 [1] : vector<16x64xf32> to vector<16xf32>
    %64 = vector.shape_cast %63 : vector<16xf32> to vector<16x1xf32>
    %cst_39 = arith.constant 6.400000e+01 : f32
    %65 = vector.broadcast %cst_39 : f32 to vector<16x1xf32>
    %66 = arith.divf %64, %65 : vector<16x1xf32>
    %67 = vector.broadcast %66 : vector<16x1xf32> to vector<16x64xf32>
    %68 = arith.subf %60, %67 : vector<16x64xf32>
    %69 = arith.mulf %68, %68 : vector<16x64xf32>
    %cst_40 = arith.constant dense<0.000000e+00> : vector<16xf32>
    %70 = vector.multi_reduction <add>, %69, %cst_40 [1] : vector<16x64xf32> to vector<16xf32>
    %71 = vector.shape_cast %70 : vector<16xf32> to vector<16x1xf32>
    %cst_41 = arith.constant 6.400000e+01 : f32
    %72 = vector.broadcast %cst_41 : f32 to vector<16x1xf32>
    %73 = arith.divf %71, %72 : vector<16x1xf32>
    %cst_42 = arith.constant 9.99999974E-6 : f32
    %74 = vector.broadcast %cst_42 : f32 to vector<16x1xf32>
    %75 = arith.addf %73, %74 : vector<16x1xf32>
    %76 = math.rsqrt %75 : vector<16x1xf32>
    %77 = vector.broadcast %76 : vector<16x1xf32> to vector<16x64xf32>
    %78 = arith.mulf %68, %77 : vector<16x64xf32>
    %79 = vector.broadcast %61 : vector<1x64xf32> to vector<16x64xf32>
    %80 = arith.mulf %78, %79 : vector<16x64xf32>
    %81 = vector.broadcast %62 : vector<1x64xf32> to vector<16x64xf32>
    %82 = arith.addf %80, %81 : vector<16x64xf32>
    %c0_43 = arith.constant 0 : index
    %c0_44 = arith.constant 0 : index
    %83 = vector.load %arg15[%c0_43, %c0_44] : memref<16x64xf32, #tpu.memory_space<vmem>>, vector<16x64xf32>
    tpu.vector_store %arg15[%c0_43, %c0_44], %82 {strides = array<i32>} : memref<16x64xf32, #tpu.memory_space<vmem>>, vector<16x64xf32>,
    return
  }
  func.func @transform_0(%arg0: i32) -> (i32, i32) {
    %c0_i32 = arith.constant 0 : i32
    %c0_i32_0 = arith.constant 0 : i32
    return %arg0, %c0_i32 : i32, i32
  }
  func.func @transform_1(%arg0: i32) -> (i32, i32) {
    %c0_i32 = arith.constant 0 : i32
    %c0_i32_0 = arith.constant 0 : i32
    %c0_i32_1 = arith.constant 0 : i32
    return %c0_i32, %c0_i32_0 : i32, i32
  }
  func.func @transform_2(%arg0: i32) -> (i32, i32) {
    %c0_i32 = arith.constant 0 : i32
    %c0_i32_0 = arith.constant 0 : i32
    %c0_i32_1 = arith.constant 0 : i32
    return %c0_i32, %c0_i32_0 : i32, i32
  }
  func.func @transform_3(%arg0: i32) -> (i32, i32) {
    %c0_i32 = arith.constant 0 : i32
    %c0_i32_0 = arith.constant 0 : i32
    %c0_i32_1 = arith.constant 0 : i32
    return %c0_i32, %c0_i32_0 : i32, i32
  }
  func.func @transform_4(%arg0: i32) -> (i32, i32) {
    %c0_i32 = arith.constant 0 : i32
    %c0_i32_0 = arith.constant 0 : i32
    %c0_i32_1 = arith.constant 0 : i32
    return %c0_i32, %c0_i32_0 : i32, i32
  }
  func.func @transform_5(%arg0: i32) -> (i32, i32) {
    %c0_i32 = arith.constant 0 : i32
    %c0_i32_0 = arith.constant 0 : i32
    %c0_i32_1 = arith.constant 0 : i32
    return %c0_i32, %c0_i32_0 : i32, i32
  }
  func.func @transform_6(%arg0: i32) -> (i32, i32) {
    %c0_i32 = arith.constant 0 : i32
    %c0_i32_0 = arith.constant 0 : i32
    %c0_i32_1 = arith.constant 0 : i32
    return %c0_i32, %c0_i32_0 : i32, i32
  }
  func.func @transform_7(%arg0: i32) -> (i32, i32) {
    %c0_i32 = arith.constant 0 : i32
    %c0_i32_0 = arith.constant 0 : i32
    %c0_i32_1 = arith.constant 0 : i32
    return %c0_i32, %c0_i32_0 : i32, i32
  }
  func.func @transform_8(%arg0: i32) -> (i32, i32) {
    %c0_i32 = arith.constant 0 : i32
    %c0_i32_0 = arith.constant 0 : i32
    %c0_i32_1 = arith.constant 0 : i32
    return %c0_i32, %c0_i32_0 : i32, i32
  }
  func.func @transform_9(%arg0: i32) -> (i32, i32) {
    %c0_i32 = arith.constant 0 : i32
    %c0_i32_0 = arith.constant 0 : i32
    %c0_i32_1 = arith.constant 0 : i32
    return %c0_i32, %c0_i32_0 : i32, i32
  }
  func.func @transform_10(%arg0: i32) -> (i32, i32) {
    %c0_i32 = arith.constant 0 : i32
    %c0_i32_0 = arith.constant 0 : i32
    %c0_i32_1 = arith.constant 0 : i32
    return %c0_i32, %c0_i32_0 : i32, i32
  }
  func.func @transform_11(%arg0: i32) -> (i32, i32) {
    %c0_i32 = arith.constant 0 : i32
    %c0_i32_0 = arith.constant 0 : i32
    %c0_i32_1 = arith.constant 0 : i32
    return %c0_i32, %c0_i32_0 : i32, i32
  }
  func.func @transform_12(%arg0: i32) -> (i32, i32) {
    %c0_i32 = arith.constant 0 : i32
    %c0_i32_0 = arith.constant 0 : i32
    %c0_i32_1 = arith.constant 0 : i32
    return %c0_i32, %c0_i32_0 : i32, i32
  }
  func.func @transform_13(%arg0: i32) -> (i32, i32) {
    %c0_i32 = arith.constant 0 : i32
    %c0_i32_0 = arith.constant 0 : i32
    %c0_i32_1 = arith.constant 0 : i32
    return %c0_i32, %c0_i32_0 : i32, i32
  }
  func.func @transform_14(%arg0: i32) -> (i32, i32) {
    %c0_i32 = arith.constant 0 : i32
    %c0_i32_0 = arith.constant 0 : i32
    return %arg0, %c0_i32 : i32, i32
  }
}

</mosaic_0001>

<bundles_post_ra>
// kernel: ca_pooling.2
= control target key start
LH: loop header
LB: loop body
LE: loop exit
PB: predicated region body
PF: predicated region fallthrough
CT: control target
= control target key end

     0   :  { %vm53_vm0 = vcmask 523264   ;;  %vm1726_vm1 = vcmask 1041409   ;;  %vm1729_vm2 = vcmask 1042434   ;;  %vm1732_vm3 = vcmask 1043459   ;;  %s3230_s0 = inlined_call_operand.vmem [shape: f32[128,64], index: 0, kind: input, shape index: {}]   ;;  %s3231_s6 = inlined_call_operand.vmem [shape: f32[64,64], index: 6, kind: input, shape index: {}]   ;;  %s3232_s3 = inlined_call_operand.vmem [shape: f32[64,128], index: 3, kind: input, shape index: {}]   ;;  %s3233_s1 = inlined_call_operand.vmem [shape: f32[1,64], index: 1, kind: input, shape index: {}]   ;;  %s3234_s2 = inlined_call_operand.vmem [shape: f32[1,64], index: 2, kind: input, shape index: {}]   ;;  %s3235_s9 = inlined_call_operand.vmem [shape: f32[128,64], index: 9, kind: input, shape index: {}]   ;;  %s3236_s4 = inlined_call_operand.vmem [shape: f32[1,128], index: 4, kind: input, shape index: {}]   ;;  %s3237_s5 = inlined_call_operand.vmem [shape: f32[1,128], index: 5, kind: input, shape index: {}]   ;;  %s3238_s7 = inlined_call_operand.vmem [shape: f32[1,64], index: 7, kind: input, shape index: {}]   ;;  %s3239_s8 = inlined_call_operand.vmem [shape: f32[1,64], index: 8, kind: input, shape index: {}]   ;;  %s3240_s10 = inlined_call_operand.vmem [shape: f32[16,64], index: 10, kind: output, shape index: {}]  }
   0x1   :  { %v35_v0 = vld [vmem:[%s3230_s0] sm:$0xff]  ;;  %v37_v1 = vld [vmem:[%s3230_s0 + $0x10] sm:$0xff]  ;;  %v36_v2 = vld [vmem:[%s3230_s0 + $0x8] sm:$0xff]  ;;  %vm1735_vm4 = vcmask 1044484   ;;  %vm1738_vm5 = vcmask 1045509   ;;  %vm1741_vm6 = vcmask 1046534  }
   0x2   :  { %v54_v3 = vsel %vm53_vm0, %v35_v0, 0.0  ;;  %v60_v4 = vsel %vm53_vm0, %v37_v1, 0.0  ;;  %v38_v5 = vld [vmem:[%s3230_s0 + $0x18] sm:$0xff]  ;;  %v57_v6 = vsel %vm53_vm0, %v36_v2, 0.0  ;;  %v39_v8 = vld [vmem:[%s3230_s0 + $0x20] sm:$0xff]  ;;  %v40_v9 = vld [vmem:[%s3230_s0 + $0x28] sm:$0xff] }
   0x3   :  { %55 = vadd.xlane.f32.xlu0 %v54_v3  ;;  %61 = vadd.xlane.f32.xlu1 %v60_v4  ;;  %v63_v7 = vsel %vm53_vm0, %v38_v5, 0.0  ;;  %v66_v10 = vsel %vm53_vm0, %v39_v8, 0.0  ;;  %v69_v11 = vsel %vm53_vm0, %v40_v9, 0.0  ;;  %v2382_v12 = vld [vmem:[%s3230_s0 + $0x30] sm:$0xff]  ;;  %v2387_v13 = vld [vmem:[%s3230_s0 + $0x38] sm:$0xff]  ;;  %v2396_v16 = vld [vmem:[%s3230_s0 + $0x40] sm:$0xff] }
   0x4   :  { %v72_v14 = vsel %vm53_vm0, %v2382_v12, 0.0  ;;  %v75_v15 = vsel %vm53_vm0, %v2387_v13, 0.0  ;;  %v2401_v17 = vld [vmem:[%s3230_s0 + $0x48] sm:$0xff]  ;;  %v78_v18 = vsel %vm53_vm0, %v2396_v16, 0.0  ;;  %v2410_v20 = vld [vmem:[%s3230_s0 + $0x50] sm:$0xff]  ;;  %v2415_v21 = vld [vmem:[%s3230_s0 + $0x58] sm:$0xff] }
   0x5   :  { %v81_v19 = vsel %vm53_vm0, %v2401_v17, 0.0  ;;  %v84_v22 = vsel %vm53_vm0, %v2410_v20, 0.0  ;;  %v87_v23 = vsel %vm53_vm0, %v2415_v21, 0.0  ;;  %v2424_v24 = vld [vmem:[%s3230_s0 + $0x60] sm:$0xff]  ;;  %v2429_v25 = vld [vmem:[%s3230_s0 + $0x68] sm:$0xff]  ;;  %v2438_v28 = vld [vmem:[%s3230_s0 + $0x70] sm:$0xff] }
   0x6   :  { %v90_v26 = vsel %vm53_vm0, %v2424_v24, 0.0  ;;  %v93_v27 = vsel %vm53_vm0, %v2429_v25, 0.0  ;;  %v2443_v29 = vld [vmem:[%s3230_s0 + $0x78] sm:$0xff]  ;;  %v96_v30 = vsel %vm53_vm0, %v2438_v28, 0.0  ;;  %vm1744_vm7 = vcmask 1047559  }
   0x7   :  { %58 = vadd.xlane.f32.xlu0 %v57_v6  ;;  %64 = vadd.xlane.f32.xlu1 %v63_v7  ;;  %v99_v31 = vsel %vm53_vm0, %v2443_v29, 0.0 }
   0xb   :  { %67 = vadd.xlane.f32.xlu0 %v66_v10  ;;  %70 = vadd.xlane.f32.xlu1 %v69_v11 }
   0xf   :  { %73 = vadd.xlane.f32.xlu0 %v72_v14  ;;  %76 = vadd.xlane.f32.xlu1 %v75_v15 }
  0x13   :  { %79 = vadd.xlane.f32.xlu0 %v78_v18  ;;  %82 = vadd.xlane.f32.xlu1 %v81_v19 }
  0x17   :  { %85 = vadd.xlane.f32.xlu0 %v84_v22  ;;  %88 = vadd.xlane.f32.xlu1 %v87_v23 }
  0x1b   :  { %91 = vadd.xlane.f32.xlu0 %v90_v26  ;;  %94 = vadd.xlane.f32.xlu1 %v93_v27 }
  0x1f   :  { %97 = vadd.xlane.f32.xlu0 %v96_v30  ;;  %100 = vadd.xlane.f32.xlu1 %v99_v31 }
  0x90   :  { %v56_v32 = vpop.xlane.xlu0 %55  ;;  %v62_v33 = vpop.xlane.xlu1 %61 }
  0x91   :  { %v103_v34 = vmul.f32 0.015625, %v56_v32  ;;  %v105_v35 = vmul.f32 0.015625, %v62_v33 }
  0x93   :  { %v2449_v36 = vsub.f32 %v35_v0, %v103_v34  ;;  %v2451_v37 = vsub.f32 %v37_v1, %v105_v35 }
  0x94   :  { %v59_v38 = vpop.xlane.xlu0 %58  ;;  %v65_v39 = vpop.xlane.xlu1 %64 }
  0x95   :  { %v104_v40 = vmul.f32 0.015625, %v59_v38  ;;  %v106_v41 = vmul.f32 0.015625, %v65_v39  ;;  %v135_v42 = vmul.f32 %v2449_v36, %v2449_v36  ;;  %v137_v43 = vmul.f32 %v2451_v37, %v2451_v37 }
  0x97   :  { %v2457_v44 = vsub.f32 %v36_v2, %v104_v40  ;;  %v2459_v45 = vsub.f32 %v38_v5, %v106_v41  ;;  %v151_v46 = vsel %vm53_vm0, %v135_v42, 0.0  ;;  %v157_v49 = vsel %vm53_vm0, %v137_v43, 0.0 }
  0x98   :  { %152 = vadd.xlane.f32.xlu0 %v151_v46  ;;  %v68_v47 = vpop.xlane.xlu0 %67  ;;  %v71_v48 = vpop.xlane.xlu1 %70 }
  0x99   :  { %v107_v50 = vmul.f32 0.015625, %v68_v47  ;;  %v108_v51 = vmul.f32 0.015625, %v71_v48  ;;  %v136_v52 = vmul.f32 %v2457_v44, %v2457_v44  ;;  %v138_v53 = vmul.f32 %v2459_v45, %v2459_v45  ;;  %v308_v47 = vld [vmem:[%s3231_s6 + $0x8] sm:$0xff]  ;;  %v515_v48 = vld [vmem:[%s3232_s3] sm:$0xff] }
  0x9b   :  { %v2467_v54 = vsub.f32 %v39_v8, %v107_v50  ;;  %v2469_v55 = vsub.f32 %v40_v9, %v108_v51  ;;  %v154_v56 = vsel %vm53_vm0, %v136_v52, 0.0  ;;  %v160_v59 = vsel %vm53_vm0, %v138_v53, 0.0  ;;  %v516_v50 = vld [vmem:[%s3232_s3 + $0x8] sm:$0xff] }
  0x9c   :  { %158 = vadd.xlane.f32.xlu0 %v157_v49  ;;  %155 = vadd.xlane.f32.xlu1 %v154_v56  ;;  %v74_v57 = vpop.xlane.xlu0 %73  ;;  %v77_v58 = vpop.xlane.xlu1 %76  ;;  %v2090_v56 = vpack.c.bf16 %v516_v50, %v515_v48  ;;  %v2590_v50 = vld [vmem:[%s3233_s1] ss:$0 sm:$0xff] }
  0x9d   :  { %v109_v60 = vmul.f32 0.015625, %v74_v57  ;;  %v110_v61 = vmul.f32 0.015625, %v77_v58  ;;  %v139_v62 = vmul.f32 %v2467_v54, %v2467_v54  ;;  %v140_v63 = vmul.f32 %v2469_v55, %v2469_v55 }
  0x9e   :  { %2091 = vmatprep.subr.bf16.mxu1 %v2090_v56 }
  0x9f   :  { %v2478_v0 = vsub.f32 %v2382_v12, %v109_v60  ;;  %v2481_v1 = vsub.f32 %v2387_v13, %v110_v61  ;;  %v163_v2 = vsel %vm53_vm0, %v139_v62, 0.0  ;;  %v166_v5 = vsel %vm53_vm0, %v140_v63, 0.0  ;;  %v517_v60 = vld [vmem:[%s3232_s3 + $0x10] sm:$0xff]  ;;  %v518_v62 = vld [vmem:[%s3232_s3 + $0x18] sm:$0xff]  ;;  %2093 = vmatpush3.bf16.msra.mxu1 %v2090_v56 }
  0xa0   :  { %161 = vadd.xlane.f32.xlu1 %v160_v59  ;;  %164 = vadd.xlane.f32.xlu0 %v163_v2  ;;  %v80_v3 = vpop.xlane.xlu0 %79  ;;  %v83_v4 = vpop.xlane.xlu1 %82  ;;  %v2094_v2 = vpack.c.bf16 %v518_v62, %v517_v60 }
  0xa1   :  { %v111_v6 = vmul.f32 0.015625, %v80_v3  ;;  %v112_v7 = vmul.f32 0.015625, %v83_v4  ;;  %v141_v8 = vmul.f32 %v2478_v0, %v2478_v0  ;;  %v142_v9 = vmul.f32 %v2481_v1, %v2481_v1  ;;  %v311_v4 = vld [vmem:[%s3231_s6 + $0x20] sm:$0xff] }
  0xa2   :  { %2095 = vmatprep.subr.bf16.mxu1 %v2094_v2 }
  0xa3   :  { %v2490_v10 = vsub.f32 %v2396_v16, %v111_v6  ;;  %v2493_v11 = vsub.f32 %v2401_v17, %v112_v7  ;;  %v169_v12 = vsel %vm53_vm0, %v141_v8, 0.0  ;;  %v172_v15 = vsel %vm53_vm0, %v142_v9, 0.0  ;;  %v519_v6 = vld [vmem:[%s3232_s3 + $0x20] sm:$0xff]  ;;  %v520_v8 = vld [vmem:[%s3232_s3 + $0x28] sm:$0xff]  ;;  %2097 = vmatpush3.bf16.msra.mxu1 %v2094_v2 }
  0xa4   :  { %167 = vadd.xlane.f32.xlu1 %v166_v5  ;;  %170 = vadd.xlane.f32.xlu0 %v169_v12  ;;  %v86_v13 = vpop.xlane.xlu0 %85  ;;  %v89_v14 = vpop.xlane.xlu1 %88  ;;  %v312_v5 = vld [vmem:[%s3231_s6 + $0x28] sm:$0xff]  ;;  %v2098_v9 = vpack.c.bf16 %v520_v8, %v519_v6  ;;  %v313_v12 = vld [vmem:[%s3231_s6 + $0x30] sm:$0xff] }
  0xa5   :  { %v113_v18 = vmul.f32 0.015625, %v86_v13  ;;  %v114_v19 = vmul.f32 0.015625, %v89_v14  ;;  %v143_v22 = vmul.f32 %v2490_v10, %v2490_v10  ;;  %v144_v16 = vmul.f32 %v2493_v11, %v2493_v11  ;;  %v314_v13 = vld [vmem:[%s3231_s6 + $0x38] sm:$0xff] }
  0xa6   :  { %v2082_v7 = vpack.c.bf16 %v312_v5, %v311_v4  ;;  %2099 = vmatprep.subr.bf16.mxu1 %v2098_v9  ;;  %v2086_v14 = vpack.c.bf16 %v314_v13, %v313_v12 }
  0xa7   :  { %v2502_v23 = vsub.f32 %v2410_v20, %v113_v18  ;;  %v2505_v17 = vsub.f32 %v2415_v21, %v114_v19  ;;  %v175_v26 = vsel %vm53_vm0, %v143_v22, 0.0  ;;  %v178_v31 = vsel %vm53_vm0, %v144_v16, 0.0  ;;  %v522_v18 = vld [vmem:[%s3232_s3 + $0x38] sm:$0xff]  ;;  %2101 = vmatpush3.bf16.msra.mxu1 %v2098_v9 }
  0xa8   :  { %173 = vadd.xlane.f32.xlu1 %v172_v15  ;;  %176 = vadd.xlane.f32.xlu0 %v175_v26  ;;  %v92_v27 = vpop.xlane.xlu0 %91  ;;  %v95_v30 = vpop.xlane.xlu1 %94  ;;  %v521_v15 = vld [vmem:[%s3232_s3 + $0x30] sm:$0xff] }
  0xa9   :  { %v115_v32 = vmul.f32 0.015625, %v92_v27  ;;  %v116_v33 = vmul.f32 0.015625, %v95_v30  ;;  %v145_v34 = vmul.f32 %v2502_v23, %v2502_v23  ;;  %v146_v20 = vmul.f32 %v2505_v17, %v2505_v17 }
  0xaa   :  { %v2102_v19 = vpack.c.bf16 %v522_v18, %v521_v15 }
  0xab   :  { %v2514_v35 = vsub.f32 %v2424_v24, %v115_v32  ;;  %v2517_v21 = vsub.f32 %v2429_v25, %v116_v33  ;;  %v181_v38 = vsel %vm53_vm0, %v145_v34, 0.0  ;;  %v184_v41 = vsel %vm53_vm0, %v146_v20, 0.0  ;;  %v307_v25 = vld [vmem:[%s3231_s6] sm:$0xff] }
  0xac   :  { %179 = vadd.xlane.f32.xlu1 %v178_v31  ;;  %182 = vadd.xlane.f32.xlu0 %v181_v38  ;;  %v98_v39 = vpop.xlane.xlu0 %97  ;;  %v101_v40 = vpop.xlane.xlu1 %100  ;;  %v2074_v49 = vpack.c.bf16 %v308_v47, %v307_v25 }
  0xad   :  { %v117_v42 = vmul.f32 0.015625, %v98_v39  ;;  %v118_v43 = vmul.f32 0.015625, %v101_v40  ;;  %v147_v46 = vmul.f32 %v2514_v35, %v2514_v35  ;;  %v148_v24 = vmul.f32 %v2517_v21, %v2517_v21  ;;  %2103 = vmatprep.subr.bf16.mxu1 %v2102_v19 }
  0xae   :  { %2075 = vmatprep.subr.bf16.mxu0 %v2074_v49  ;;  %2105 = vmatpush3.bf16.msra.mxu1 %v2102_v19 }
  0xaf   :  { %v2538_v51 = vsub.f32 %v2438_v28, %v117_v42  ;;  %v2541_v52 = vsub.f32 %v2443_v29, %v118_v43  ;;  %v187_v53 = vsel %vm53_vm0, %v147_v46, 0.0  ;;  %v190_v57 = vsel %vm53_vm0, %v148_v24, 0.0  ;;  %v309_v28 = vld [vmem:[%s3231_s6 + $0x10] sm:$0xff]  ;;  %v310_v29 = vld [vmem:[%s3231_s6 + $0x18] sm:$0xff]  ;;  %2077 = vmatpush3.bf16.msra.mxu0 %v2074_v49 }
  0xb0   :  { %185 = vadd.xlane.f32.xlu1 %v184_v41  ;;  %188 = vadd.xlane.f32.xlu0 %v187_v53  ;;  %v2078_v61 = vpack.c.bf16 %v310_v29, %v309_v28  ;;  %v2596_v28 = vld [vmem:[%s3234_s2] ss:$0 sm:$0xff] }
  0xb1   :  { %v149_v58 = vmul.f32 %v2538_v51, %v2538_v51  ;;  %v150_v59 = vmul.f32 %v2541_v52, %v2541_v52 }
  0xb2   :  { %2079 = vmatprep.subr.bf16.mxu0 %v2078_v61 }
  0xb3   :  { %v193_v63 = vsel %vm53_vm0, %v149_v58, 0.0  ;;  %v196_v3 = vsel %vm53_vm0, %v150_v59, 0.0  ;;  %2081 = vmatpush3.bf16.msra.mxu0 %v2078_v61 }
  0xb4   :  { %191 = vadd.xlane.f32.xlu1 %v190_v57  ;;  %194 = vadd.xlane.f32.xlu0 %v193_v63 }
  0xb5   :  { %2083 = vmatprep.subr.bf16.mxu0 %v2082_v7 }
  0xb7   :  { %2085 = vmatpush3.bf16.msra.mxu0 %v2082_v7 }
  0xb8   :  { %197 = vadd.xlane.f32.xlu1 %v196_v3  ;;  %2087 = vmatprep.subr.bf16.mxu0 %v2086_v14 }
  0xbb   :  { %2089 = vmatpush3.bf16.msra.mxu0 %v2086_v14 }
 0x125   :  { %v153_v22 = vpop.xlane.xlu0 %152 }
 0x126   :  { %v199_v16 = vmul.f32 0.015625, %v153_v22 }
 0x128   :  { %v215_v26 = vadd.f32 1e-06, %v199_v16 }
 0x129   :  { %v156_v27 = vpop.xlane.xlu1 %155  ;;  %v159_v30 = vpop.xlane.xlu0 %158 }
 0x12a   :  { %2171 = vrsqrt.f32 %v215_v26  ;;  %v200_v31 = vmul.f32 0.015625, %v156_v27  ;;  %v201_v32 = vmul.f32 0.015625, %v159_v30 }
 0x12c   :  { %v216_v33 = vadd.f32 1e-06, %v200_v31  ;;  %v217_v34 = vadd.f32 1e-06, %v201_v32 }
 0x12d   :  { %v162_v20 = vpop.xlane.xlu1 %161  ;;  %v165_v38 = vpop.xlane.xlu0 %164 }
 0x12e   :  { %2173 = vrsqrt.f32 %v216_v33  ;;  %v202_v39 = vmul.f32 0.015625, %v162_v20  ;;  %v203_v40 = vmul.f32 0.015625, %v165_v38 }
 0x12f   :  { %2175 = vrsqrt.f32 %v217_v34 }
 0x130   :  { %v218_v41 = vadd.f32 1e-06, %v202_v39  ;;  %v219_v42 = vadd.f32 1e-06, %v203_v40 }
 0x131   :  { %v168_v43 = vpop.xlane.xlu1 %167  ;;  %v171_v46 = vpop.xlane.xlu0 %170 }
 0x132   :  { %2177 = vrsqrt.f32 %v218_v41  ;;  %v204_v24 = vmul.f32 0.015625, %v168_v43  ;;  %v205_v25 = vmul.f32 0.015625, %v171_v46 }
 0x133   :  { %2179 = vrsqrt.f32 %v219_v42 }
 0x134   :  { %v2172_v47 = vpop.eup %2171  ;;  %v220_v48 = vadd.f32 1e-06, %v204_v24  ;;  %v221_v49 = vadd.f32 1e-06, %v205_v25 }
 0x135   :  { %v174_v53 = vpop.xlane.xlu1 %173  ;;  %v177_v56 = vpop.xlane.xlu0 %176  ;;  %v247_v57 = vmul.f32 %v2172_v47, %v2449_v36 }
 0x136   :  { %2181 = vrsqrt.f32 %v220_v48  ;;  %v206_v58 = vmul.f32 0.015625, %v174_v53  ;;  %v207_v59 = vmul.f32 0.015625, %v177_v56 }
 0x137   :  { %2183 = vrsqrt.f32 %v221_v49  ;;  %v269_v29 = vmul.f32 %v2590_v50, %v247_v57 }
 0x138   :  { %v2174_v60 = vpop.eup %2173  ;;  %v222_v61 = vadd.f32 1e-06, %v206_v58  ;;  %v223_v62 = vadd.f32 1e-06, %v207_v59 }
 0x139   :  { %v2176_v63 = vpop.eup %2175  ;;  %v180_v2 = vpop.xlane.xlu1 %179  ;;  %v291_v4 = vadd.f32 %v2596_v28, %v269_v29  ;;  %v248_v36 = vmul.f32 %v2174_v60, %v2457_v44 }
 0x13a   :  { %v183_v3 = vpop.xlane.xlu0 %182  ;;  %2185 = vrsqrt.f32 %v222_v61  ;;  %v208_v5 = vmul.f32 0.015625, %v180_v2  ;;  %v249_v7 = vmul.f32 %v2176_v63, %v2451_v37 }
 0x13b   :  { %v209_v6 = vmul.f32 0.015625, %v183_v3  ;;  %2187 = vrsqrt.f32 %v223_v62  ;;  %1919 = vmatprep.mubr.msk.f32.mxu0 %vm53_vm0, %v291_v4  ;;  %1959 = vmatprep.mubr.msk.f32.mxu1 %vm53_vm0, %v291_v4  ;;  %v270_v8 = vmul.f32 %v2590_v50, %v248_v36 }
 0x13c   :  { %v2178_v9 = vpop.eup %2177  ;;  %v224_v12 = vadd.f32 1e-06, %v208_v5  ;;  %v271_v14 = vmul.f32 %v2590_v50, %v249_v7 }
 0x13d   :  { %v225_v13 = vadd.f32 1e-06, %v209_v6  ;;  %v2180_v15 = vpop.eup %2179  ;;  %v186_v18 = vpop.xlane.xlu1 %185  ;;  %v292_v19 = vadd.f32 %v2596_v28, %v270_v8  ;;  %v250_v22 = vmul.f32 %v2178_v9, %v2459_v45 }
 0x13e   :  { %v189_v44 = vpop.xlane.xlu0 %188  ;;  %2189 = vrsqrt.f32 %v224_v12  ;;  %v210_v37 = vmul.f32 0.015625, %v186_v18  ;;  %v293_v26 = vadd.f32 %v2596_v28, %v271_v14  ;;  %v251_v30 = vmul.f32 %v2180_v15, %v2467_v54 }
 0x13f   :  { %v211_v16 = vmul.f32 0.015625, %v189_v44  ;;  %2191 = vrsqrt.f32 %v225_v13  ;;  %1920 = vmatmul.mubr.msk.f32.vlgmr.msra.gmra.mrb[0].mxu0 %vm53_vm0, %v292_v19  ;;  %1960 = vmatmul.mubr.msk.f32.vlgmr.msra.gmra.mrb[0].mxu1 %vm53_vm0, %v292_v19  ;;  %v272_v27 = vmul.f32 %v2590_v50, %v250_v22 }
 0x140   :  { %v2182_v31 = vpop.eup %2181  ;;  %v226_v32 = vadd.f32 1e-06, %v210_v37  ;;  %1922 = vmatprep.mubr.msk.f32.mxu0 %vm53_vm0, %v293_v26  ;;  %1962 = vmatprep.mubr.msk.f32.mxu1 %vm53_vm0, %v293_v26  ;;  %v273_v39 = vmul.f32 %v2590_v50, %v251_v30  ;;  %v1173_v26 = vld [vmem:[%s3235_s9 + $0x8] sm:$0xff] }
 0x141   :  { %v227_v33 = vadd.f32 1e-06, %v211_v16  ;;  %v2184_v45 = vpop.eup %2183  ;;  %v192_v34 = vpop.xlane.xlu1 %191  ;;  %v294_v38 = vadd.f32 %v2596_v28, %v272_v27  ;;  %v252_v40 = vmul.f32 %v2182_v31, %v2469_v55  ;;  %v1176_v31 = vld [vmem:[%s3235_s9 + $0x20] sm:$0xff] }
 0x142   :  { %v195_v20 = vpop.xlane.xlu0 %194  ;;  %2193 = vrsqrt.f32 %v226_v32  ;;  %v212_v41 = vmul.f32 0.015625, %v192_v34  ;;  %v253_v54 = vmul.f32 %v2184_v45, %v2478_v0  ;;  %v295_v43 = vadd.f32 %v2596_v28, %v273_v39  ;;  %v1177_v32 = vld [vmem:[%s3235_s9 + $0x28] sm:$0xff]  ;;  %v1178_v45 = vld [vmem:[%s3235_s9 + $0x30] sm:$0xff]  ;;  %v1179_v34 = vld [vmem:[%s3235_s9 + $0x38] sm:$0xff] }
 0x143   :  { %v213_v42 = vmul.f32 0.015625, %v195_v20  ;;  %2195 = vrsqrt.f32 %v227_v33  ;;  %1923 = vmatmul.mubr.msk.f32.gmra.mrb[2].mxu0 %vm53_vm0, %v294_v38  ;;  %1963 = vmatmul.mubr.msk.f32.gmra.mrb[2].mxu1 %vm53_vm0, %v294_v38  ;;  %v274_v46 = vmul.f32 %v2590_v50, %v252_v40  ;;  %v2114_v33 = vpack.c.bf16 %v1177_v32, %v1176_v31  ;;  %v1180_v38 = vld [vmem:[%s3235_s9 + $0x40] sm:$0xff]  ;;  %v1181_v39 = vld [vmem:[%s3235_s9 + $0x48] sm:$0xff] }
 0x144   :  { %v2186_v24 = vpop.eup %2185  ;;  %v228_v25 = vadd.f32 1e-06, %v212_v41  ;;  %v275_v48 = vmul.f32 %v2590_v50, %v253_v54  ;;  %1925 = vmatprep.mubr.msk.f32.mxu0 %vm53_vm0, %v295_v43  ;;  %1965 = vmatprep.mubr.msk.f32.mxu1 %vm53_vm0, %v295_v43  ;;  %v2118_v20 = vpack.c.bf16 %v1179_v34, %v1178_v45  ;;  %v2122_v40 = vpack.c.bf16 %v1181_v39, %v1180_v38  ;;  %v1182_v41 = vld [vmem:[%s3235_s9 + $0x50] sm:$0xff]  ;;  %v1184_v43 = vld [vmem:[%s3235_s9 + $0x60] sm:$0xff] }
 0x145   :  { %v229_v47 = vadd.f32 1e-06, %v213_v42  ;;  %v2188_v55 = vpop.eup %2187  ;;  %v198_v0 = vpop.xlane.xlu1 %197  ;;  %v296_v49 = vadd.f32 %v2596_v28, %v274_v46  ;;  %v254_v53 = vmul.f32 %v2186_v24, %v2481_v1  ;;  %v1183_v42 = vld [vmem:[%s3235_s9 + $0x58] sm:$0xff]  ;;  %v1185_v46 = vld [vmem:[%s3235_s9 + $0x68] sm:$0xff]  ;;  %v1186_v24 = vld [vmem:[%s3235_s9 + $0x70] sm:$0xff] }
 0x146   :  { %2197 = vrsqrt.f32 %v228_v25  ;;  %v214_v56 = vmul.f32 0.015625, %v198_v0  ;;  %v297_v57 = vadd.f32 %v2596_v28, %v275_v48  ;;  %v255_v58 = vmul.f32 %v2188_v55, %v2490_v10  ;;  %v2728_v55 = vld [vmem:[%s3236_s4] ss:$0 sm:$0xff] }
 0x147   :  { %2199 = vrsqrt.f32 %v229_v47  ;;  %1926 = vmatmul.mubr.msk.f32.gmra.mrb[4].mxu0 %vm53_vm0, %v296_v49  ;;  %1966 = vmatmul.mubr.msk.f32.gmra.mrb[4].mxu1 %vm53_vm0, %v296_v49  ;;  %v276_v59 = vmul.f32 %v2590_v50, %v254_v53  ;;  %v2126_v54 = vpack.c.bf16 %v1183_v42, %v1182_v41  ;;  %v2130_v25 = vpack.c.bf16 %v1185_v46, %v1184_v43  ;;  %v1187_v47 = vld [vmem:[%s3235_s9 + $0x78] sm:$0xff] }
 0x148   :  { %v2190_v29 = vpop.eup %2189  ;;  %v230_v60 = vadd.f32 1e-06, %v214_v56  ;;  %1928 = vmatprep.mubr.msk.f32.mxu0 %vm53_vm0, %v297_v57  ;;  %1968 = vmatprep.mubr.msk.f32.mxu1 %vm53_vm0, %v297_v57  ;;  %v277_v1 = vmul.f32 %v2590_v50, %v255_v58  ;;  %v2134_v48 = vpack.c.bf16 %v1187_v47, %v1186_v24 }
 0x149   :  { %v2192_v61 = vpop.eup %2191  ;;  %v298_v62 = vadd.f32 %v2596_v28, %v276_v59  ;;  %v256_v10 = vmul.f32 %v2190_v29, %v2493_v11 }
 0x14a   :  { %2201 = vrsqrt.f32 %v230_v60  ;;  %v299_v63 = vadd.f32 %v2596_v28, %v277_v1  ;;  %v257_v2 = vmul.f32 %v2192_v61, %v2502_v23 }
 0x14b   :  { %1929 = vmatmul.mubr.msk.f32.gmra.mrb[6].mxu0 %vm53_vm0, %v298_v62  ;;  %1969 = vmatmul.mubr.msk.f32.gmra.mrb[6].mxu1 %vm53_vm0, %v298_v62  ;;  %v278_v3 = vmul.f32 %v2590_v50, %v256_v10  ;;  %v788_v62 = vlaneseq }
 0x14c   :  { %v2194_v4 = vpop.eup %2193  ;;  %1931 = vmatprep.mubr.msk.f32.mxu0 %vm53_vm0, %v299_v63  ;;  %1971 = vmatprep.mubr.msk.f32.mxu1 %vm53_vm0, %v299_v63  ;;  %v279_v36 = vmul.f32 %v2590_v50, %v257_v2 }
 0x14d   :  { %v2196_v5 = vpop.eup %2195  ;;  %v300_v11 = vadd.f32 %v2596_v28, %v278_v3  ;;  %v258_v6 = vmul.f32 %v2194_v4, %v2505_v17 }
 0x14e   :  { %v301_v23 = vadd.f32 %v2596_v28, %v279_v36  ;;  %v259_v7 = vmul.f32 %v2196_v5, %v2514_v35 }
 0x14f   :  { %1932 = vmatmul.mubr.msk.f32.gmra.mrb[8].mxu0 %vm53_vm0, %v300_v11  ;;  %1972 = vmatmul.mubr.msk.f32.gmra.mrb[8].mxu1 %vm53_vm0, %v300_v11  ;;  %v280_v8 = vmul.f32 %v2590_v50, %v258_v6 }
 0x150   :  { %v2198_v9 = vpop.eup %2197  ;;  %1934 = vmatprep.mubr.msk.f32.mxu0 %vm53_vm0, %v301_v23  ;;  %1974 = vmatprep.mubr.msk.f32.mxu1 %vm53_vm0, %v301_v23  ;;  %v281_v12 = vmul.f32 %v2590_v50, %v259_v7 }
 0x151   :  { %v2200_v13 = vpop.eup %2199  ;;  %v302_v17 = vadd.f32 %v2596_v28, %v280_v8  ;;  %v260_v14 = vmul.f32 %v2198_v9, %v2517_v21  ;;  %v2758_v9 = vshrl.u32 %v788_v62, 7 }
 0x152   :  { %v303_v35 = vadd.f32 %v2596_v28, %v281_v12  ;;  %v261_v15 = vmul.f32 %v2200_v13, %v2538_v51 }
 0x153   :  { %1935 = vmatmul.mubr.msk.f32.gmra.mrb[10].mxu0 %vm53_vm0, %v302_v17  ;;  %1975 = vmatmul.mubr.msk.f32.gmra.mrb[10].mxu1 %vm53_vm0, %v302_v17  ;;  %v282_v18 = vmul.f32 %v2590_v50, %v260_v14 }
 0x154   :  { %v2202_v44 = vpop.eup %2201  ;;  %1937 = vmatprep.mubr.msk.f32.mxu0 %vm53_vm0, %v303_v35  ;;  %1977 = vmatprep.mubr.msk.f32.mxu1 %vm53_vm0, %v303_v35  ;;  %v283_v19 = vmul.f32 %v2590_v50, %v261_v15 }
 0x155   :  { %v304_v22 = vadd.f32 %v2596_v28, %v282_v18  ;;  %v262_v21 = vmul.f32 %v2202_v44, %v2541_v52  ;;  %v1172_v52 = vld [vmem:[%s3235_s9] sm:$0xff] }
 0x156   :  { %v305_v37 = vadd.f32 %v2596_v28, %v283_v19  ;;  %v2106_v27 = vpack.c.bf16 %v1173_v26, %v1172_v52  ;;  %v2773_v44 = vld [vmem:[%s3237_s5] sm:$0x1] }
 0x157   :  { %1938 = vmatmul.mubr.msk.f32.gmra.mrb[12].mxu0 %vm53_vm0, %v304_v22  ;;  %1978 = vmatmul.mubr.msk.f32.gmra.mrb[12].mxu1 %vm53_vm0, %v304_v22  ;;  %v284_v51 = vmul.f32 %v2590_v50, %v262_v21  ;;  %v1174_v50 = vld [vmem:[%s3235_s9 + $0x10] sm:$0xff] }
 0x158   :  { %1940 = vmatprep.mubr.msk.f32.mxu0 %vm53_vm0, %v305_v37  ;;  %1980 = vmatprep.mubr.msk.f32.mxu1 %vm53_vm0, %v305_v37 }
 0x159   :  { %v306_v16 = vadd.f32 %v2596_v28, %v284_v51  ;;  %2107 = vmatprep.subr.bf16.mxu0 %v2106_v27  ;;  %2139 = vmatprep.subr.bf16.mxu1 %v2106_v27  ;;  %v1175_v28 = vld [vmem:[%s3235_s9 + $0x18] sm:$0xff] }
 0x15a   :  { %2109 = vmatpush3.bf16.msra.mxu0 %v2106_v27  ;;  %2141 = vmatpush3.bf16.msra.mxu1 %v2106_v27  ;;  %v2110_v30 = vpack.c.bf16 %v1175_v28, %v1174_v50  ;;  %v2780_v50 = vsub.s32 0, %v2758_v9 }
 0x15b   :  { %1941 = vmatmul.mubr.msk.f32.gmra.mrb[14].mxu0 %vm53_vm0, %v306_v16  ;;  %1981 = vmatmul.mubr.msk.f32.gmra.mrb[14].mxu1 %vm53_vm0, %v306_v16 }
 0x15c   :  { %2111 = vmatprep.subr.bf16.mxu0 %v2110_v30  ;;  %2143 = vmatprep.subr.bf16.mxu1 %v2110_v30 }
 0x15e   :  { %2113 = vmatpush3.bf16.msra.mxu0 %v2110_v30  ;;  %2145 = vmatpush3.bf16.msra.mxu1 %v2110_v30 }
 0x15f   :  { %2115 = vmatprep.subr.bf16.mxu0 %v2114_v33  ;;  %2147 = vmatprep.subr.bf16.mxu1 %v2114_v33 }
 0x162   :  { %2117 = vmatpush3.bf16.msra.mxu0 %v2114_v33  ;;  %2149 = vmatpush3.bf16.msra.mxu1 %v2114_v33 }
 0x163   :  { %2119 = vmatprep.subr.bf16.mxu0 %v2118_v20  ;;  %2151 = vmatprep.subr.bf16.mxu1 %v2118_v20 }
 0x166   :  { %2121 = vmatpush3.bf16.msra.mxu0 %v2118_v20  ;;  %2153 = vmatpush3.bf16.msra.mxu1 %v2118_v20 }
 0x167   :  { %2123 = vmatprep.subr.bf16.mxu0 %v2122_v40  ;;  %2155 = vmatprep.subr.bf16.mxu1 %v2122_v40 }
 0x16a   :  { %2125 = vmatpush3.bf16.msra.mxu0 %v2122_v40  ;;  %2157 = vmatpush3.bf16.msra.mxu1 %v2122_v40 }
 0x16b   :  { %2127 = vmatprep.subr.bf16.mxu0 %v2126_v54  ;;  %2159 = vmatprep.subr.bf16.mxu1 %v2126_v54 }
 0x16e   :  { %2129 = vmatpush3.bf16.msra.mxu0 %v2126_v54  ;;  %2161 = vmatpush3.bf16.msra.mxu1 %v2126_v54 }
 0x16f   :  { %2131 = vmatprep.subr.bf16.mxu0 %v2130_v25  ;;  %2163 = vmatprep.subr.bf16.mxu1 %v2130_v25 }
 0x172   :  { %2133 = vmatpush3.bf16.msra.mxu0 %v2130_v25  ;;  %2165 = vmatpush3.bf16.msra.mxu1 %v2130_v25 }
 0x173   :  { %2135 = vmatprep.subr.bf16.mxu0 %v2134_v48  ;;  %2167 = vmatprep.subr.bf16.mxu1 %v2134_v48 }
 0x176   :  { %2137 = vmatpush3.bf16.msra.mxu0 %v2134_v48  ;;  %2169 = vmatpush3.bf16.msra.mxu1 %v2134_v48 }
 0x212   :  { %v2730_v0 = vpop.f32.mrb[0].mxu0  ;;  %v1961_v49 = vpop.f32.mrb[0].mxu1 }
 0x213   :  { %v2733_v53 = vadd.f32 %v1961_v49, %v2728_v55  ;;  %v2735_v56 = vpop.f32.mrb[1].mxu0  ;;  %v596_v57 = vpop.f32.mrb[1].mxu1 }
 0x214   :  { %v2738_v58 = vadd.f32 %v2728_v55, %v596_v57 }
 0x215   :  { %v682_v59 = vrot.slane %v2733_v53, 4 }
 0x216   :  { %v676_v29 = vrot.slane %v2738_v58, 4  ;;  %v2742_v60 = vpop.f32.mrb[2].mxu0  ;;  %v1964_v1 = vpop.f32.mrb[2].mxu1 }
 0x217   :  { %v683_v61 = vmax.f32 %v2733_v53, %v682_v59  ;;  %v2746_v10 = vadd.f32 %v1964_v1, %v2728_v55  ;;  %v2748_v63 = vpop.f32.mrb[3].mxu0  ;;  %v606_v2 = vpop.f32.mrb[3].mxu1 }
 0x218   :  { %v677_v3 = vmax.f32 %v2738_v58, %v676_v29  ;;  %v2752_v4 = vadd.f32 %v2728_v55, %v606_v2 }
 0x219   :  { %v684_v36 = vrot.slane %v683_v61, 2  ;;  %v694_v5 = vrot.slane %v2746_v10, 4 }
 0x21a   :  { %v678_v11 = vrot.slane %v677_v3, 2  ;;  %v688_v6 = vrot.slane %v2752_v4, 4  ;;  %v2756_v23 = vpop.f32.mrb[4].mxu0  ;;  %v1967_v7 = vpop.f32.mrb[4].mxu1 }
 0x21b   :  { %v685_v8 = vmax.f32 %v683_v61, %v684_v36  ;;  %v695_v12 = vmax.f32 %v2746_v10, %v694_v5  ;;  %v2762_v13 = vadd.f32 %v1967_v7, %v2728_v55  ;;  %v2764_v17 = vpop.f32.mrb[5].mxu0  ;;  %v616_v14 = vpop.f32.mrb[5].mxu1 }
 0x21c   :  { %v679_v35 = vmax.f32 %v677_v3, %v678_v11  ;;  %v689_v15 = vmax.f32 %v2752_v4, %v688_v6  ;;  %v2768_v18 = vadd.f32 %v2728_v55, %v616_v14 }
 0x21d   :  { %v686_v19 = vrot.slane %v685_v8, 1  ;;  %v696_v22 = vrot.slane %v695_v12, 2  ;;  %v706_v21 = vrot.slane %v2762_v13, 4 }
 0x21e   :  { %v680_v37 = vrot.slane %v679_v35, 1  ;;  %v690_v51 = vrot.slane %v689_v15, 2  ;;  %v700_v16 = vrot.slane %v2768_v18, 4  ;;  %v2777_v52 = vpop.f32.mrb[6].mxu0  ;;  %v1970_v26 = vpop.f32.mrb[6].mxu1 }
 0x21f   :  { %3241 = vst [vmem:[#allocation2_spill] sm:$0xff] %v2777_v52  ;;  %v687_v27 = vmax.f32 %v685_v8, %v686_v19  ;;  %v697_v28 = vmax.f32 %v695_v12, %v696_v22  ;;  %v707_v30 = vmax.f32 %v2762_v13, %v706_v21  ;;  %v2783_v31 = vpop.f32.mrb[7].mxu0  ;;  %v626_v32 = vpop.f32.mrb[7].mxu1  ;;  %v2789_v54 = vadd.f32 %v1970_v26, %v2728_v55 }
 0x220   :  { %3242 = vst [vmem:[#allocation3_spill] sm:$0xff] %v2783_v31  ;;  %v681_v33 = vmax.f32 %v679_v35, %v680_v37  ;;  %v691_v45 = vmax.f32 %v689_v15, %v690_v51  ;;  %v701_v34 = vmax.f32 %v2768_v18, %v700_v16 }
 0x221   :  { %v773_v20 = vmax.f32 %v687_v27, %v2773_v44  ;;  %v698_v38 = vrot.slane %v697_v28, 1  ;;  %v708_v39 = vrot.slane %v707_v30, 2  ;;  %v718_v6 = vrot.slane %v2789_v54, 4 }
 0x222   :  { %v772_v40 = vmax.f32 %v681_v33, %v2773_v44  ;;  %v692_v41 = vrot.slane %v691_v45, 1  ;;  %v702_v42 = vrot.slane %v701_v34, 2  ;;  %v2791_v43 = vpop.f32.mrb[8].mxu0  ;;  %v2793_v46 = vpop.f32.mrb[8].mxu1 }
 0x223   :  { %3243 = vst [vmem:[#allocation4_spill] sm:$0xff] %v2791_v43  ;;  %v795_v24 = vrot.slane %v773_v20, %v2780_v50  ;;  %v901_v25 = vsub.f32 %v2773_v44, %v773_v20  ;;  %v699_v47 = vmax.f32 %v697_v28, %v698_v38  ;;  %v709_v48 = vmax.f32 %v707_v30, %v708_v39  ;;  %v2797_v49 = vpop.f32.mrb[9].mxu0  ;;  %v2799_v57 = vpop.f32.mrb[9].mxu1 }
 0x224   :  { %3244 = vst [vmem:[#allocation5_spill] sm:$0xff] %v2797_v49  ;;  %v791_v59 = vrot.slane %v772_v40, %v2780_v50  ;;  %v900_v29 = vsub.f32 %v2773_v44, %v772_v40  ;;  %v693_v1 = vmax.f32 %v691_v45, %v692_v41  ;;  %v703_v61 = vmax.f32 %v701_v34, %v702_v42 }
 0x225   :  { %v853_v62 = vsub.f32 %v2733_v53, %v795_v24  ;;  %v775_v2 = vmax.f32 %v699_v47, %v2773_v44  ;;  %v710_v3 = vrot.slane %v709_v48, 1  ;;  %v918_v14 = vmul.f32 1.442695, %v901_v25 }
 0x226   :  { %v852_v36 = vsub.f32 %v2738_v58, %v791_v59  ;;  %v774_v5 = vmax.f32 %v693_v1, %v2773_v44  ;;  %v704_v11 = vrot.slane %v703_v61, 1  ;;  %v2808_v7 = vpop.f32.mrb[10].mxu0  ;;  %v2810_v8 = vpop.f32.mrb[10].mxu1  ;;  %v916_v58 = vmul.f32 1.442695, %v900_v29 }
 0x227   :  { %3245 = vst [vmem:[#allocation6_spill] sm:$0xff] %v2808_v7  ;;  %v870_v12 = vmul.f32 1.442695, %v853_v62  ;;  %v803_v35 = vrot.slane %v775_v2, %v2780_v50  ;;  %v903_v53 = vsub.f32 %v2773_v44, %v775_v2  ;;  %v2814_v15 = vpop.f32.mrb[11].mxu0  ;;  %v2816_v19 = vpop.f32.mrb[11].mxu1  ;;  %v711_v51 = vmax.f32 %v709_v48, %v710_v3 }
 0x228   :  { %3246 = vst [vmem:[#allocation7_spill] sm:$0xff] %v2814_v15  ;;  %v799_v22 = vrot.slane %v774_v5, %v2780_v50  ;;  %v902_v21 = vsub.f32 %v2773_v44, %v774_v5  ;;  %v868_v16 = vmul.f32 1.442695, %v852_v36  ;;  %v705_v27 = vmax.f32 %v703_v61, %v704_v11 }
 0x229   :  { %2203 = vpow2.f32 %v870_v12  ;;  %v855_v37 = vsub.f32 %v2746_v10, %v803_v35  ;;  %v922_v33 = vmul.f32 1.442695, %v903_v53  ;;  %v777_v45 = vmax.f32 %v711_v51, %v2773_v44 }
 0x22a   :  { %v854_v26 = vsub.f32 %v2752_v4, %v799_v22  ;;  %v2822_v28 = vpop.f32.mrb[12].mxu0  ;;  %v2824_v30 = vpop.f32.mrb[12].mxu1  ;;  %2205 = vpow2.f32 %v918_v14  ;;  %v719_v34 = vmax.f32 %v2789_v54, %v718_v6  ;;  %v920_v10 = vmul.f32 1.442695, %v902_v21 }
 0x22b   :  { %3247 = vst [vmem:[#allocation8_spill] sm:$0xff] %v2822_v28  ;;  %v2828_v20 = vpop.f32.mrb[13].mxu0  ;;  %v2830_v38 = vpop.f32.mrb[13].mxu1  ;;  %2207 = vpow2.f32 %v916_v58  ;;  %v776_v39 = vmax.f32 %v705_v27, %v2773_v44  ;;  %v2834_v4 = vadd.f32 %v2728_v55, %v626_v32  ;;  %v874_v40 = vmul.f32 1.442695, %v855_v37 }
 0x22c   :  { %3248 = vst [vmem:[#allocation9_spill] sm:$0xff] %v2828_v20  ;;  %v811_v41 = vrot.slane %v777_v45, %v2780_v50  ;;  %v905_v42 = vsub.f32 %v2773_v44, %v777_v45  ;;  %v720_v24 = vrot.slane %v719_v34, 2  ;;  %2209 = vpow2.f32 %v868_v16 }
 0x22d   :  { %v872_v25 = vmul.f32 1.442695, %v854_v26  ;;  %v807_v47 = vrot.slane %v776_v39, %v2780_v50  ;;  %v712_v48 = vrot.slane %v2834_v4, 4  ;;  %2211 = vpow2.f32 %v922_v33 }
 0x22e   :  { %v2840_v59 = vpop.f32.mrb[14].mxu0  ;;  %v2842_v29 = vpop.f32.mrb[14].mxu1  ;;  %v857_v32 = vsub.f32 %v2762_v13, %v811_v41  ;;  %v904_v1 = vsub.f32 %v2773_v44, %v776_v39  ;;  %v721_v61 = vmax.f32 %v719_v34, %v720_v24  ;;  %2213 = vpow2.f32 %v920_v10 }
 0x22f   :  { %3249 = vst [vmem:[#allocation10_spill] sm:$0xff] %v2840_v59  ;;  %v2846_v62 = vpop.f32.mrb[15].mxu0  ;;  %v2848_v2 = vpop.f32.mrb[15].mxu1  ;;  %v926_v3 = vmul.f32 1.442695, %v905_v42  ;;  %v713_v36 = vmax.f32 %v2834_v4, %v712_v48  ;;  %v2853_v5 = vadd.f32 %v2793_v46, %v2728_v55  ;;  %2215 = vpow2.f32 %v874_v40 }
 0x230   :  { %3250 = vst [vmem:[#allocation11_spill] sm:$0xff] %v2846_v62  ;;  %v856_v11 = vsub.f32 %v2768_v18, %v807_v47  ;;  %v722_v6 = vrot.slane %v721_v61, 1  ;;  %2217 = vpow2.f32 %v872_v25  ;;  %v2299_v14 = vmov 1966171168  }
 0x231   :  { %v714_v13 = vrot.slane %v713_v36, 2  ;;  %v730_v12 = vrot.slane %v2853_v5, 4  ;;  %v2857_v35 = vunpack.c.l.s4 %v2299_v14  ;;  %v878_v58 = vmul.f32 1.442695, %v857_v32 }
 0x232   :  { %v924_v22 = vmul.f32 1.442695, %v904_v1  ;;  %v723_v21 = vmax.f32 %v721_v61, %v722_v6  ;;  %v2863_v46 = vadd.f32 %v2728_v55, %v2799_v57  ;;  %2219 = vpow2.f32 %v926_v3 }
 0x233   :  { %v2859_v53 = vpop.eup %2203  ;;  %v715_v18 = vmax.f32 %v713_v36, %v714_v13  ;;  %v731_v51 = vmax.f32 %v2853_v5, %v730_v12  ;;  %v876_v26 = vmul.f32 1.442695, %v856_v11  ;;  %v2873_v45 = vadd.f32 %v2810_v8, %v2728_v55 }
 0x234   :  { %v954_v37 = vrot.slane %v2859_v53, 4  ;;  %v2867_v16 = vpop.eup %2205  ;;  %v779_v27 = vmax.f32 %v723_v21, %v2773_v44  ;;  %v724_v33 = vrot.slane %v2863_v46, 4  ;;  %v2880_v40 = vadd.f32 %v2728_v55, %v2816_v19 }
 0x235   :  { %v2875_v34 = vpop.eup %2207  ;;  %v716_v10 = vrot.slane %v715_v18, 1  ;;  %v732_v39 = vrot.slane %v731_v51, 2  ;;  %v742_v25 = vrot.slane %v2873_v45, 4  ;;  %2221 = vpow2.f32 %v924_v22 }
 0x236   :  { %v955_v57 = vadd.f32 %v2859_v53, %v954_v37  ;;  %v819_v41 = vrot.slane %v779_v27, %v2780_v50  ;;  %v907_v42 = vsub.f32 %v2773_v44, %v779_v27  ;;  %v725_v24 = vmax.f32 %v2863_v46, %v724_v33  ;;  %v2886_v8 = vpop.eup %2209 }
 0x237   :  { %v717_v48 = vmax.f32 %v715_v18, %v716_v10  ;;  %v733_v32 = vmax.f32 %v731_v51, %v732_v39  ;;  %v736_v1 = vrot.slane %v2880_v40, 4  ;;  %v2889_v61 = vpop.eup %2211  ;;  %v743_v36 = vmax.f32 %v2873_v45, %v742_v25 }
 0x238   :  { %v956_v47 = vrot.slane %v955_v57, 2  ;;  %v859_v19 = vsub.f32 %v2789_v54, %v819_v41  ;;  %v726_v3 = vrot.slane %v725_v24, 2  ;;  %v2893_v11 = vpop.eup %2213  ;;  %2223 = vpow2.f32 %v878_v58 }
 0x239   :  { %v778_v13 = vmax.f32 %v717_v48, %v2773_v44  ;;  %v734_v12 = vrot.slane %v733_v32, 1  ;;  %v737_v14 = vmax.f32 %v2880_v40, %v736_v1  ;;  %v2897_v21 = vpop.eup %2215  ;;  %v930_v37 = vmul.f32 1.442695, %v907_v42 }
 0x23a   :  { %v957_v6 = vadd.f32 %v956_v47, %v955_v57  ;;  %v727_v18 = vmax.f32 %v725_v24, %v726_v3  ;;  %v744_v51 = vrot.slane %v743_v36, 2  ;;  %v2899_v22 = vpop.eup %2217  ;;  %2225 = vpow2.f32 %v876_v26 }
 0x23b   :  { %v815_v27 = vrot.slane %v778_v13, %v2780_v50  ;;  %v906_v33 = vsub.f32 %v2773_v44, %v778_v13  ;;  %v735_v10 = vmax.f32 %v733_v32, %v734_v12  ;;  %v738_v41 = vrot.slane %v737_v14, 2 }
 0x23c   :  { %v958_v54 = vrot.slane %v957_v6, 1  ;;  %v728_v57 = vrot.slane %v727_v18, 1  ;;  %v745_v39 = vmax.f32 %v743_v36, %v744_v51  ;;  %v2903_v25 = vpop.eup %2219  ;;  %v882_v48 = vmul.f32 1.442695, %v859_v19 }
 0x23d   :  { %v858_v58 = vsub.f32 %v2834_v4, %v815_v27  ;;  %v781_v42 = vmax.f32 %v735_v10, %v2773_v44  ;;  %2227 = vpow2.f32 %v930_v37  ;;  %v739_v3 = vmax.f32 %v737_v14, %v738_v41 }
 0x23e   :  { %v959_v47 = vadd.f32 %v958_v54, %v957_v6  ;;  %v729_v24 = vmax.f32 %v727_v18, %v728_v57  ;;  %v746_v1 = vrot.slane %v745_v39, 1  ;;  %v928_v32 = vmul.f32 1.442695, %v906_v33 }
 0x23f   :  { %v880_v13 = vmul.f32 1.442695, %v858_v58  ;;  %v827_v26 = vrot.slane %v781_v42, %v2780_v50  ;;  %v909_v36 = vsub.f32 %v2773_v44, %v781_v42  ;;  %v740_v19 = vrot.slane %v739_v3, 1  ;;  %v2917_v18 = vpop.eup %2221 }
 0x240   :  { %v1045_v62 = vadd.f32 %v2867_v16, %v959_v47  ;;  %v780_v12 = vmax.f32 %v729_v24, %v2773_v44  ;;  %v747_v6 = vmax.f32 %v745_v39, %v746_v1  ;;  %2229 = vpow2.f32 %v882_v48 }
 0x241   :  { %v861_v4 = vsub.f32 %v2853_v5, %v827_v26  ;;  %v2914_v37 = vadd.f32 %v2824_v30, %v2728_v55  ;;  %v1483_v14 = vunpack.c.0.s8 %v2857_v35  ;;  %v934_v51 = vmul.f32 1.442695, %v909_v36 }
 0x242   :  { %2231 = vrcp.f32 %v1045_v62  ;;  %v823_v54 = vrot.slane %v780_v12, %v2780_v50  ;;  %v908_v27 = vsub.f32 %v2773_v44, %v780_v12  ;;  %v783_v33 = vmax.f32 %v747_v6, %v2773_v44  ;;  %v2923_v57 = vpop.eup %2223 }
 0x243   :  { %2233 = vpow2.f32 %v928_v32  ;;  %v741_v10 = vmax.f32 %v739_v3, %v740_v19  ;;  %v754_v5 = vrot.slane %v2914_v37, 4  ;;  %v886_v30 = vmul.f32 1.442695, %v861_v4 }
 0x244   :  { %2235 = vpow2.f32 %v880_v13  ;;  %v860_v35 = vsub.f32 %v2863_v46, %v823_v54  ;;  %v2928_v62 = vadd.f32 %v2728_v55, %v2830_v38  ;;  %v932_v39 = vmul.f32 1.442695, %v908_v27  ;;  %v2933_v58 = vpop.eup %2225 }
 0x245   :  { %v835_v41 = vrot.slane %v783_v33, %v2780_v50  ;;  %v911_v47 = vsub.f32 %v2773_v44, %v783_v33  ;;  %v782_v48 = vmax.f32 %v741_v10, %v2773_v44  ;;  %2237 = vpow2.f32 %v934_v51 }
 0x246   :  { %v884_v42 = vmul.f32 1.442695, %v860_v35  ;;  %v755_v24 = vmax.f32 %v2914_v37, %v754_v5  ;;  %v748_v1 = vrot.slane %v2928_v62, 4  ;;  %2239 = vpow2.f32 %v886_v30 }
 0x247   :  { %v863_v46 = vsub.f32 %v2873_v45, %v835_v41  ;;  %v938_v3 = vmul.f32 1.442695, %v911_v47  ;;  %v831_v38 = vrot.slane %v782_v48, %v2780_v50  ;;  %v910_v13 = vsub.f32 %v2773_v44, %v782_v48  ;;  %v2940_v32 = vpop.eup %2227 }
 0x248   :  { %v756_v26 = vrot.slane %v755_v24, 2  ;;  %v749_v36 = vmax.f32 %v2928_v62, %v748_v1  ;;  %2241 = vpow2.f32 %v932_v39  ;;  %v2946_v45 = vadd.f32 %v2842_v29, %v2728_v55 }
 0x249   :  { %v890_v12 = vmul.f32 1.442695, %v863_v46  ;;  %v862_v6 = vsub.f32 %v2880_v40, %v831_v38  ;;  %v936_v19 = vmul.f32 1.442695, %v910_v13  ;;  %2243 = vpow2.f32 %v884_v42 }
 0x24a   :  { %v757_v4 = vmax.f32 %v755_v24, %v756_v26  ;;  %v750_v51 = vrot.slane %v749_v36, 2  ;;  %v2948_v54 = vpop.eup %2229  ;;  %2245 = vpow2.f32 %v938_v3  ;;  %v2952_v27 = vadd.f32 %v2728_v55, %v2848_v2 }
 0x24b   :  { %v948_v33 = vrot.slane %v2886_v8, 4  ;;  %v2956_v10 = vsub.s32 %v1483_v14, %v2758_v9  ;;  %2247 = vpow2.f32 %v890_v12  ;;  %v766_v29 = vrot.slane %v2946_v45, 4 }
 0x24c   :  { %v2958_v40 = vpop.eup %2231  ;;  %v758_v5 = vrot.slane %v757_v4, 1  ;;  %v751_v30 = vmax.f32 %v749_v36, %v750_v51  ;;  %v888_v39 = vmul.f32 1.442695, %v862_v6  ;;  %2249 = vpow2.f32 %v936_v19 }
 0x24d   :  { %v2961_v35 = vpop.eup %2233  ;;  %v760_v41 = vrot.slane %v2952_v27, 4  ;;  %v949_v55 = vadd.f32 %v2886_v8, %v948_v33  ;;  %v767_v14 = vmax.f32 %v2946_v45, %v766_v29  ;;  %v960_v48 = vrot.slane %v2899_v22, 4 }
 0x24e   :  { %v2965_v2 = vpop.eup %2235  ;;  %v759_v47 = vmax.f32 %v757_v4, %v758_v5  ;;  %v752_v9 = vrot.slane %v751_v30, 1  ;;  %v1083_v1 = vrot.slane %v2958_v40, %v2780_v50  ;;  %v966_v46 = vrot.slane %v2897_v21, 4 }
 0x24f   :  { %v761_v42 = vmax.f32 %v2952_v27, %v760_v41  ;;  %v950_v24 = vrot.slane %v949_v55, 2  ;;  %v2973_v3 = vpop.eup %2237  ;;  %v768_v26 = vrot.slane %v767_v14, 2  ;;  %v961_v36 = vadd.f32 %v2899_v22, %v960_v48 }
 0x250   :  { %v785_v38 = vmax.f32 %v759_v47, %v2773_v44  ;;  %v753_v13 = vmax.f32 %v751_v30, %v752_v9  ;;  %v967_v19 = vadd.f32 %v2897_v21, %v966_v46  ;;  %v972_v4 = vrot.slane %v2933_v58, 4  ;;  %v2979_v51 = vpop.eup %2239 }
 0x251   :  { %v762_v12 = vrot.slane %v761_v42, 2  ;;  %v951_v6 = vadd.f32 %v950_v24, %v949_v55  ;;  %v769_v41 = vmax.f32 %v767_v14, %v768_v26  ;;  %v962_v48 = vrot.slane %v961_v36, 2 }
 0x252   :  { %v843_v33 = vrot.slane %v785_v38, %v2780_v50  ;;  %v913_v5 = vsub.f32 %v2773_v44, %v785_v38  ;;  %v784_v29 = vmax.f32 %v753_v13, %v2773_v44  ;;  %v2984_v47 = vpop.eup %2241  ;;  %v968_v59 = vrot.slane %v967_v19, 2 }
 0x253   :  { %v763_v30 = vmax.f32 %v761_v42, %v762_v12  ;;  %v952_v9 = vrot.slane %v951_v6, 1  ;;  %v2986_v55 = vpop.eup %2243  ;;  %v770_v38 = vrot.slane %v769_v41, 1  ;;  %v963_v26 = vadd.f32 %v962_v48, %v961_v36 }
 0x254   :  { %v865_v24 = vsub.f32 %v2914_v37, %v843_v33  ;;  %v942_v46 = vmul.f32 1.442695, %v913_v5  ;;  %v839_v20 = vrot.slane %v784_v29, %v2780_v50  ;;  %v912_v28 = vsub.f32 %v2773_v44, %v784_v29  ;;  %v2991_v15 = vpop.eup %2245 }
 0x255   :  { %v764_v13 = vrot.slane %v763_v30, 1  ;;  %v953_v14 = vadd.f32 %v952_v9, %v951_v6  ;;  %v2993_v7 = vpop.eup %2247  ;;  %2251 = vpow2.f32 %v888_v39  ;;  %v2997_v49 = vmul.f32 %v2859_v53, %v1083_v1 }
 0x256   :  { %v894_v42 = vmul.f32 1.442695, %v865_v24  ;;  %v864_v12 = vsub.f32 %v2928_v62, %v839_v20  ;;  %v2999_v37 = vpop.eup %2249  ;;  %v940_v33 = vmul.f32 1.442695, %v912_v28  ;;  %v771_v5 = vmax.f32 %v769_v41, %v770_v38 }
 0x257   :  { %v765_v29 = vmax.f32 %v763_v30, %v764_v13  ;;  %v964_v43 = vrot.slane %v963_v26, 1  ;;  %2253 = vpow2.f32 %v942_v46  ;;  %v1044_v31 = vadd.f32 %v2875_v34, %v953_v14 }
 0x258   :  { %v969_v6 = vadd.f32 %v968_v59, %v967_v19  ;;  %v973_v36 = vadd.f32 %v2933_v58, %v972_v4  ;;  %v892_v9 = vmul.f32 1.442695, %v864_v12  ;;  %v787_v39 = vmax.f32 %v771_v5, %v2773_v44 }
 0x259   :  { %v3005_v20 = vmax.f32 %v765_v29, %v2773_v44  ;;  %v965_v53 = vadd.f32 %v964_v43, %v963_v26  ;;  %2255 = vpow2.f32 %v894_v42  ;;  %v978_v28 = vrot.slane %v2923_v57, 4 }
 0x25a   :  { %v970_v62 = vrot.slane %v969_v6, 1  ;;  %v974_v1 = vrot.slane %v973_v36, 2  ;;  %2257 = vpow2.f32 %v940_v33  ;;  %v851_v41 = vrot.slane %v787_v39, %v2780_v50 }
 0x25b   :  { %v915_v30 = vsub.f32 %v2773_v44, %v787_v39  ;;  %v847_v59 = vrot.slane %v3005_v20, %v2780_v50  ;;  %2259 = vrcp.f32 %v1044_v31  ;;  %v1046_v19 = vadd.f32 %v2893_v11, %v965_v53 }
 0x25c   :  { %v971_v4 = vadd.f32 %v970_v62, %v969_v6  ;;  %v975_v48 = vadd.f32 %v974_v1, %v973_v36  ;;  %2261 = vpow2.f32 %v892_v9  ;;  %v867_v43 = vsub.f32 %v2946_v45, %v851_v41 }
 0x25d   :  { %v946_v24 = vmul.f32 1.442695, %v915_v30  ;;  %v866_v46 = vsub.f32 %v2952_v27, %v847_v59  ;;  %2263 = vrcp.f32 %v1046_v19  ;;  %v979_v14 = vadd.f32 %v2923_v57, %v978_v28 }
 0x25e   :  { %v976_v13 = vrot.slane %v975_v48, 1  ;;  %v898_v26 = vmul.f32 1.442695, %v867_v43  ;;  %v1047_v31 = vadd.f32 %v2889_v61, %v971_v4  ;;  %v984_v12 = vrot.slane %v2965_v2, 4 }
 0x25f   :  { %v896_v42 = vmul.f32 1.442695, %v866_v46  ;;  %v3020_v33 = vpop.eup %2251  ;;  %2265 = vpow2.f32 %v946_v24  ;;  %v980_v5 = vrot.slane %v979_v14, 2  ;;  %v990_v27 = vrot.slane %v2948_v54, 4 }
 0x260   :  { %v977_v45 = vadd.f32 %v976_v13, %v975_v48  ;;  %2267 = vpow2.f32 %v898_v26  ;;  %v985_v29 = vadd.f32 %v2965_v2, %v984_v12  ;;  %v996_v6 = vrot.slane %v2986_v55, 4 }
 0x261   :  { %v1002_v36 = vrot.slane %v2979_v51, 4  ;;  %v3026_v9 = vpop.eup %2253  ;;  %2269 = vpow2.f32 %v896_v42  ;;  %v981_v53 = vadd.f32 %v980_v5, %v979_v14  ;;  %v991_v62 = vadd.f32 %v2948_v54, %v990_v27 }
 0x262   :  { %v1048_v39 = vadd.f32 %v2917_v18, %v977_v45  ;;  %2271 = vrcp.f32 %v1047_v31  ;;  %v986_v1 = vrot.slane %v985_v29, 2  ;;  %v997_v28 = vadd.f32 %v2986_v55, %v996_v6 }
 0x263   :  { %v1003_v41 = vadd.f32 %v2979_v51, %v1002_v36  ;;  %v3032_v30 = vpop.eup %2255  ;;  %v982_v59 = vrot.slane %v981_v53, 1  ;;  %v992_v19 = vrot.slane %v991_v62, 2  ;;  %v1008_v4 = vrot.slane %v3020_v33, 4 }
 0x264   :  { %2273 = vrcp.f32 %v1048_v39  ;;  %v3035_v48 = vpop.eup %2257  ;;  %v987_v43 = vadd.f32 %v986_v1, %v985_v29  ;;  %v998_v24 = vrot.slane %v997_v28, 2  ;;  %v1157_v13 = vmul.f32 %v2958_v40, %v2867_v16 }
 0x265   :  { %v1004_v46 = vrot.slane %v1003_v41, 2  ;;  %v2260_v14 = vpop.eup %2259  ;;  %v983_v26 = vadd.f32 %v982_v59, %v981_v53  ;;  %v993_v42 = vadd.f32 %v992_v19, %v991_v62  ;;  %v1009_v31 = vadd.f32 %v3020_v33, %v1008_v4 }
 0x266   :  { %v1014_v12 = vrot.slane %v2993_v7, 4  ;;  %v3041_v45 = vpop.eup %2261  ;;  %v1079_v5 = vrot.slane %v2260_v14, %v2780_v50  ;;  %v988_v27 = vrot.slane %v987_v43, 1  ;;  %v999_v6 = vadd.f32 %v998_v24, %v997_v28 }
 0x267   :  { %v1005_v36 = vadd.f32 %v1004_v46, %v1003_v41  ;;  %v2264_v29 = vpop.eup %2263  ;;  %v1049_v39 = vadd.f32 %v2903_v25, %v983_v26  ;;  %v994_v1 = vrot.slane %v993_v42, 1  ;;  %v1010_v38 = vrot.slane %v1009_v31, 2 }
 0x268   :  { %v1156_v16 = vmul.f32 %v2260_v14, %v2875_v34  ;;  %v1140_v40 = vmul.f32 %v2886_v8, %v1079_v5  ;;  %v1087_v53 = vrot.slane %v2264_v29, %v2780_v50  ;;  %v989_v62 = vadd.f32 %v988_v27, %v987_v43 }
 0x269   :  { %v1000_v59 = vrot.slane %v999_v6, 1  ;;  %v3048_v19 = vpop.eup %2265  ;;  %2275 = vrcp.f32 %v1049_v39  ;;  %v995_v4 = vadd.f32 %v994_v1, %v993_v42  ;;  %v1006_v52 = vrot.slane %v1005_v36, 1 }
 0x26a   :  { %v1011_v28 = vadd.f32 %v1010_v38, %v1009_v31  ;;  %v3050_v41 = vpop.eup %2267  ;;  %2015 = vmatprep.mubr.f32.mxu0 %v1140_v40  ;;  %v1142_v24 = vmul.f32 %v2899_v22, %v1087_v53  ;;  %v1050_v46 = vadd.f32 %v2961_v35, %v989_v62  ;;  %v1158_v8 = vmul.f32 %v2264_v29, %v2893_v11 }
 0x26b   :  { %v1001_v34 = vadd.f32 %v1000_v59, %v999_v6  ;;  %v3055_v14 = vpop.eup %2269  ;;  %2016 = vmatmul.mubr.f32.vlgmr.msra.gmra.mrb[16].mxu0 %v2997_v49  ;;  %v1051_v43 = vadd.f32 %v2940_v32, %v995_v4  ;;  %v1007_v26 = vadd.f32 %v1006_v52, %v1005_v36  ;;  %v1477_v5 = vcombine.low %v1156_v16, %v1157_v13 }
 0x26c   :  { %v1012_v42 = vrot.slane %v1011_v28, 1  ;;  %v2272_v38 = vpop.eup %2271  ;;  %2018 = vmatprep.mubr.f32.mxu0 %v1142_v24  ;;  %2277 = vrcp.f32 %v1050_v46  ;;  %v1015_v22 = vadd.f32 %v2993_v7, %v1014_v12  ;;  %v1020_v27 = vrot.slane %v3041_v45, 4 }
 0x26d   :  { %v1052_v31 = vadd.f32 %v2984_v47, %v1001_v34  ;;  %v1091_v11 = vrot.slane %v2272_v38, %v2780_v50  ;;  %2279 = vrcp.f32 %v1051_v43  ;;  %v1053_v49 = vadd.f32 %v2973_v3, %v1007_v26 }
 0x26e   :  { %v2274_v6 = vpop.eup %2273  ;;  %v1013_v29 = vadd.f32 %v1012_v42, %v1011_v28  ;;  %v3251_v52 = vsub.f32 %v2773_v44, %v3005_v20  ;;  %v1159_v39 = vmul.f32 %v2272_v38, %v2889_v61  ;;  %v1487_v16 = vrot.slane %v1477_v5, %v2956_v10 }
 0x26f   :  { %v1095_v36 = vrot.slane %v2274_v6, %v2780_v50  ;;  %2281 = vrcp.f32 %v1052_v31  ;;  %v1143_v12 = vmul.f32 %v2897_v21, %v1091_v11  ;;  %v1016_v62 = vrot.slane %v1015_v22, 2 }
 0x270   :  { %v944_v13 = vmul.f32 1.442695, %v3251_v52  ;;  %2283 = vrcp.f32 %v1053_v49  ;;  %v1054_v1 = vadd.f32 %v2999_v37, %v1013_v29  ;;  %v1478_v53 = vcombine.low %v1158_v8, %v1159_v39 }
 0x271   :  { %v1144_v40 = vmul.f32 %v2933_v58, %v1095_v36  ;;  %v1021_v59 = vadd.f32 %v3041_v45, %v1020_v27  ;;  %2019 = vmatmul.mubr.f32.gmra.mrb[18].mxu0 %v1143_v12  ;;  %v1026_v44 = vrot.slane %v3032_v30, 4  ;;  %v1032_v20 = vrot.slane %v3055_v14, 4 }
 0x272   :  { %2285 = vrcp.f32 %v1054_v1  ;;  %v1038_v61 = vrot.slane %v3050_v41, 4  ;;  %v1160_v21 = vmul.f32 %v2274_v6, %v2917_v18  ;;  %v1494_v4 = vrot.slane %v1478_v53, %v2956_v10 }
 0x273   :  { %2021 = vmatprep.mubr.f32.mxu0 %v1144_v40  ;;  %v1017_v28 = vadd.f32 %v1016_v62, %v1015_v22  ;;  %v1022_v24 = vrot.slane %v1021_v59, 2  ;;  %v2276_v58 = vpop.eup %2275  ;;  %2287 = vpow2.f32 %v944_v13  ;;  %v1027_v46 = vadd.f32 %v3032_v30, %v1026_v44 }
 0x274   :  { %v1033_v34 = vadd.f32 %v3055_v14, %v1032_v20  ;;  %v1039_v8 = vadd.f32 %v3050_v41, %v1038_v61  ;;  %v1099_v43 = vrot.slane %v2276_v58, %v2780_v50  ;;  %v1161_v26 = vmul.f32 %v2276_v58, %v2903_v25 }
 0x275   :  { %v1509_v42 = vcombine.low %v1487_v16, %v1494_v4  ;;  %v1018_v5 = vrot.slane %v1017_v28, 1  ;;  %v1023_v38 = vadd.f32 %v1022_v24, %v1021_v59  ;;  %v1028_v18 = vrot.slane %v1027_v46, 2 }
 0x276   :  { %v1034_v31 = vrot.slane %v1033_v34, 2  ;;  %v1040_v27 = vrot.slane %v1039_v8, 2  ;;  %v2278_v22 = vpop.eup %2277  ;;  %v1145_v6 = vmul.f32 %v2923_v57, %v1099_v43  ;;  %v1479_v11 = vcombine.low %v1160_v21, %v1161_v26 }
 0x277   :  { %v1517_v49 = vrot.slane %v1509_v42, %v2956_v10  ;;  %v1019_v29 = vadd.f32 %v1018_v5, %v1017_v28  ;;  %v2280_v52 = vpop.eup %2279  ;;  %v1103_v13 = vrot.slane %v2278_v22, %v2780_v50  ;;  %v1162_v36 = vmul.f32 %v2278_v22, %v2961_v35 }
 0x278   :  { %v1024_v39 = vrot.slane %v1023_v38, 1  ;;  %v1029_v25 = vadd.f32 %v1028_v18, %v1027_v46  ;;  %2022 = vmatmul.mubr.f32.gmra.mrb[20].mxu0 %v1145_v6  ;;  %v1107_v1 = vrot.slane %v2280_v52, %v2780_v50  ;;  %v1163_v16 = vmul.f32 %v2280_v52, %v2940_v32 }
 0x279   :  { %v2282_v12 = vpop.eup %2281  ;;  %v1501_v40 = vrot.slane %v1479_v11, %v2956_v10  ;;  %v1055_v57 = vadd.f32 %v2991_v15, %v1019_v29  ;;  %v1146_v62 = vmul.f32 %v2965_v2, %v1103_v13  ;;  %v1035_v58 = vadd.f32 %v1034_v31, %v1033_v34 }
 0x27a   :  { %v2284_v53 = vpop.eup %2283  ;;  %v1111_v59 = vrot.slane %v2282_v12, %v2780_v50  ;;  %v1025_v44 = vadd.f32 %v1024_v39, %v1023_v38  ;;  %v1030_v20 = vrot.slane %v1029_v25, 1  ;;  %v1147_v35 = vmul.f32 %v2948_v54, %v1107_v1 }
 0x27b   :  { %v1115_v61 = vrot.slane %v2284_v53, %v2780_v50  ;;  %v1480_v21 = vcombine.low %v1162_v36, %v1163_v16  ;;  %2289 = vrcp.f32 %v1055_v57  ;;  %2024 = vmatprep.mubr.f32.mxu0 %v1146_v62  ;;  %v1041_v54 = vadd.f32 %v1040_v27, %v1039_v8 }
 0x27c   :  { %v2286_v4 = vpop.eup %2285  ;;  %v1148_v32 = vmul.f32 %v2986_v55, %v1111_v59  ;;  %v1056_v28 = vadd.f32 %v3035_v48, %v1025_v44  ;;  %v1031_v24 = vadd.f32 %v1030_v20, %v1029_v25  ;;  %2025 = vmatmul.mubr.f32.gmra.mrb[22].mxu0 %v1147_v35  ;;  %v1036_v5 = vrot.slane %v1035_v58, 1 }
 0x27d   :  { %v1149_v2 = vmul.f32 %v2979_v51, %v1115_v61  ;;  %v1119_v46 = vrot.slane %v2286_v4, %v2780_v50  ;;  %v1508_v43 = vrot.slane %v1480_v21, %v2956_v10  ;;  %v2288_v26 = vpop.eup %2287  ;;  %v1164_v55 = vmul.f32 %v2282_v12, %v2984_v47 }
 0x27e   :  { %2027 = vmatprep.mubr.f32.mxu0 %v1148_v32  ;;  %2291 = vrcp.f32 %v1056_v28  ;;  %v1057_v42 = vadd.f32 %v3026_v9, %v1031_v24  ;;  %v1042_v34 = vrot.slane %v1041_v54, 1  ;;  %v1165_v31 = vmul.f32 %v2284_v53, %v2973_v3 }
 0x27f   :  { %v1150_v38 = vmul.f32 %v3020_v33, %v1119_v46  ;;  %v1510_v18 = vcombine.low %v1501_v40, %v1508_v43  ;;  %v1037_v51 = vadd.f32 %v1036_v5, %v1035_v58  ;;  %v1166_v33 = vmul.f32 %v2286_v4, %v2999_v37 }
 0x280   :  { %2293 = vrcp.f32 %v1057_v42  ;;  %2028 = vmatmul.mubr.f32.gmra.mrb[24].mxu0 %v1149_v2  ;;  %v1043_v8 = vadd.f32 %v1042_v34, %v1041_v54  ;;  %v1526_v27 = vcombine.low %v1164_v55, %v1165_v31 }
 0x281   :  { %v1524_v22 = vrot.slane %v1510_v18, %v2956_v10  ;;  %2030 = vmatprep.mubr.f32.mxu0 %v1150_v38  ;;  %v1058_v6 = vadd.f32 %v2288_v26, %v1037_v51 }
 0x282   :  { %v1059_v29 = vadd.f32 %v3048_v19, %v1043_v8  ;;  %v1536_v47 = vrot.slane %v1526_v27, %v2956_v10  ;;  %v3252_v8 = vld [vmem:[#allocation2_spill] sm:$0xff] }
 0x283   :  { %v1525_v11 = vcombine.low %v1517_v49, %v1524_v22  ;;  %2295 = vrcp.f32 %v1058_v6 }
 0x284   :  { %2297 = vrcp.f32 %v1059_v29 }
 0x285   :  { %v2290_v52 = vpop.eup %2289  ;;  %2071 = vmatprep.mubr.f32.mxu1 %v1525_v11  ;;  %v3253_v11 = vld [vmem:[#allocation3_spill] sm:$0xff] }
 0x286   :  { %v1123_v3 = vrot.slane %v2290_v52, %v2780_v50  ;;  %v1167_v13 = vmul.f32 %v2290_v52, %v2991_v15 }
 0x288   :  { %v2292_v36 = vpop.eup %2291  ;;  %v1151_v39 = vmul.f32 %v2993_v7, %v1123_v3  ;;  %v1527_v25 = vcombine.low %v1166_v33, %v1167_v13 }
 0x289   :  { %v1127_v49 = vrot.slane %v2292_v36, %v2780_v50  ;;  %v1168_v12 = vmul.f32 %v2292_v36, %v3035_v48 }
 0x28a   :  { %v2294_v1 = vpop.eup %2293  ;;  %2031 = vmatmul.mubr.f32.gmra.mrb[26].mxu0 %v1151_v39  ;;  %v1543_v16 = vrot.slane %v1527_v25, %v2956_v10  ;;  %v3254_v39 = vld [vmem:[#allocation4_spill] sm:$0xff] }
 0x28b   :  { %v1152_v37 = vmul.f32 %v3041_v45, %v1127_v49  ;;  %v1131_v40 = vrot.slane %v2294_v1, %v2780_v50  ;;  %v1169_v57 = vmul.f32 %v2294_v1, %v3026_v9  ;;  %v3255_v49 = vld [vmem:[#allocation5_spill] sm:$0xff] }
 0x28c   :  { %v1558_v53 = vcombine.low %v1536_v47, %v1543_v16 }
 0x28d   :  { %2033 = vmatprep.mubr.f32.mxu0 %v1152_v37  ;;  %v1153_v15 = vmul.f32 %v3032_v30, %v1131_v40  ;;  %v1528_v7 = vcombine.low %v1168_v12, %v1169_v57  ;;  %v2296_v62 = vpop.eup %2295 }
 0x28e   :  { %v1566_v59 = vrot.slane %v1558_v53, %v2956_v10  ;;  %v2298_v44 = vpop.eup %2297  ;;  %v1135_v48 = vrot.slane %v2296_v62, %v2780_v50  ;;  %v1170_v20 = vmul.f32 %v2296_v62, %v2288_v26 }
 0x28f   :  { %2034 = vmatmul.mubr.f32.gmra.mrb[28].mxu0 %v1153_v15  ;;  %v1550_v35 = vrot.slane %v1528_v7, %v2956_v10  ;;  %v1139_v45 = vrot.slane %v2298_v44, %v2780_v50  ;;  %v1171_v61 = vmul.f32 %v2298_v44, %v3048_v19  ;;  %v3131_v50 = vld [vmem:[%s3238_s7] ss:$0 sm:$0xff] }
 0x290   :  { %v1154_v9 = vmul.f32 %v3055_v14, %v1135_v48  ;;  %v442_v19 = vadd.f32 %v2730_v0, %v3131_v50  ;;  %v447_v43 = vadd.f32 %v3131_v50, %v2748_v63  ;;  %v457_v38 = vadd.f32 %v3131_v50, %v2764_v17 }
 0x291   :  { %v1155_v21 = vmul.f32 %v3050_v41, %v1139_v45  ;;  %v1529_v30 = vcombine.low %v1170_v20, %v1171_v61  ;;  %v437_v41 = vadd.f32 %v3131_v50, %v2735_v56  ;;  %v462_v56 = vadd.f32 %v2756_v23, %v3131_v50 }
 0x292   :  { %2036 = vmatprep.mubr.f32.mxu0 %v1154_v9  ;;  %v472_v27 = vadd.f32 %v3252_v8, %v3131_v50  ;;  %v467_v29 = vadd.f32 %v3131_v50, %v3253_v11  ;;  %v482_v25 = vadd.f32 %v3254_v39, %v3131_v50  ;;  %v477_v12 = vadd.f32 %v3131_v50, %v3255_v49  ;;  %v3261_v8 = vld [vmem:[#allocation11_spill] sm:$0xff] }
 0x293   :  { %2037 = vmatmul.mubr.f32.gmra.mrb[30].mxu0 %v1155_v21  ;;  %v1557_v4 = vrot.slane %v1529_v30, %v2956_v10 }
 0x295   :  { %v1559_v32 = vcombine.low %v1550_v35, %v1557_v4 }
 0x297   :  { %v1573_v28 = vrot.slane %v1559_v32, %v2956_v10  ;;  %v452_v10 = vadd.f32 %v2742_v60, %v3131_v50 }
 0x299   :  { %v1574_v24 = vcombine.low %v1566_v59, %v1573_v28 }
 0x29b   :  { %2072 = vmatmul.mubr.f32.vlgmr.msra.gmra.mrb[16].mxu1 %v1574_v24 }
 0x33e   :  { %v2017_v14 = vpop.f32.mrb[16].mxu0 }
 0x33f   :  { %v1334_v58 = vmul.f32 %v2017_v14, %v442_v19  ;;  %v1254_v2 = vpop.f32.mrb[17].mxu0  ;;  %v3256_v19 = vld [vmem:[#allocation6_spill] sm:$0xff]  ;;  %v3257_v14 = vld [vmem:[#allocation7_spill] sm:$0xff] }
 0x340   :  { %v1333_v46 = vmul.f32 %v1254_v2, %v437_v41  ;;  %v492_v41 = vadd.f32 %v3256_v19, %v3131_v50 }
 0x341   :  { %v1356_v55 = vsel %vm53_vm0, %v1334_v58, 0.0  ;;  %v487_v58 = vadd.f32 %v3131_v50, %v3257_v14 }
 0x342   :  { %v1349_v0 = vsel %vm53_vm0, %v1333_v46, 0.0  ;;  %v1357_v18 = vrot.slane %v1356_v55, 4 }
 0x343   :  { %v1350_v60 = vrot.slane %v1349_v0, 4 }
 0x344   :  { %v2020_v54 = vpop.f32.mrb[18].mxu0  ;;  %v1358_v23 = vadd.f32 %v1357_v18, %v1356_v55 }
 0x345   :  { %v1336_v26 = vmul.f32 %v2020_v54, %v452_v10  ;;  %v1264_v42 = vpop.f32.mrb[19].mxu0  ;;  %v1351_v17 = vadd.f32 %v1350_v60, %v1349_v0  ;;  %v3258_v10 = vld [vmem:[#allocation8_spill] sm:$0xff]  ;;  %v3260_v0 = vld [vmem:[#allocation10_spill] sm:$0xff] }
 0x346   :  { %v1335_v5 = vmul.f32 %v1264_v42, %v447_v43  ;;  %v1359_v1 = vrot.slane %v1358_v23, 2  ;;  %v502_v43 = vadd.f32 %v3258_v10, %v3131_v50 }
 0x347   :  { %v1370_v31 = vsel %vm53_vm0, %v1336_v26, 0.0  ;;  %v1352_v57 = vrot.slane %v1351_v17, 2 }
 0x348   :  { %v1363_v6 = vsel %vm53_vm0, %v1335_v5, 0.0  ;;  %v1371_v47 = vrot.slane %v1370_v31, 4  ;;  %v1360_v45 = vadd.f32 %v1359_v1, %v1358_v23  ;;  %v3259_v5 = vld [vmem:[#allocation9_spill] sm:$0xff] }
 0x349   :  { %v1364_v13 = vrot.slane %v1363_v6, 4  ;;  %v1353_v32 = vadd.f32 %v1352_v57, %v1351_v17  ;;  %v497_v55 = vadd.f32 %v3131_v50, %v3259_v5 }
 0x34a   :  { %v1372_v16 = vadd.f32 %v1371_v47, %v1370_v31  ;;  %v1361_v54 = vrot.slane %v1360_v45, 1 }
 0x34b   :  { %v2023_v34 = vpop.f32.mrb[20].mxu0  ;;  %v1365_v62 = vadd.f32 %v1364_v13, %v1363_v6  ;;  %v1354_v60 = vrot.slane %v1353_v32, 1 }
 0x34c   :  { %v1338_v63 = vmul.f32 %v2023_v34, %v462_v56  ;;  %v1274_v51 = vpop.f32.mrb[21].mxu0  ;;  %v1373_v61 = vrot.slane %v1372_v16, 2  ;;  %v512_v56 = vadd.f32 %v3260_v0, %v3131_v50  ;;  %v3175_v23 = vadd.f32 %v1361_v54, %v1360_v45 }
 0x34d   :  { %v1337_v22 = vmul.f32 %v1274_v51, %v457_v38  ;;  %v1366_v28 = vrot.slane %v1365_v62, 2  ;;  %v3179_v39 = vadd.f32 %v1354_v60, %v1353_v32 }
 0x34e   :  { %v1384_v37 = vsel %vm53_vm0, %v1338_v63, 0.0  ;;  %v1374_v26 = vadd.f32 %v1373_v61, %v1372_v16 }
 0x34f   :  { %v2026_v33 = vpop.f32.mrb[22].mxu0  ;;  %v1377_v53 = vsel %vm53_vm0, %v1337_v22, 0.0  ;;  %v1385_v20 = vrot.slane %v1384_v37, 4  ;;  %v1367_v31 = vadd.f32 %v1366_v28, %v1365_v62 }
 0x350   :  { %v1340_v52 = vmul.f32 %v2026_v33, %v472_v27  ;;  %v1284_v3 = vpop.f32.mrb[23].mxu0  ;;  %v1378_v9 = vrot.slane %v1377_v53, 4  ;;  %v507_v27 = vadd.f32 %v3131_v50, %v3261_v8  ;;  %v1375_v47 = vrot.slane %v1374_v26, 1 }
 0x351   :  { %v1339_v36 = vmul.f32 %v1284_v3, %v467_v29  ;;  %v1386_v2 = vadd.f32 %v1385_v20, %v1384_v37 }
 0x352   :  { %v1398_v59 = vsel %vm53_vm0, %v1340_v52, 0.0  ;;  %v1379_v42 = vadd.f32 %v1378_v9, %v1377_v53  ;;  %v3181_v53 = vadd.f32 %v1375_v47, %v1374_v26 }
 0x353   :  { %v2029_v40 = vpop.f32.mrb[24].mxu0  ;;  %v1391_v44 = vsel %vm53_vm0, %v1339_v36, 0.0  ;;  %v1399_v30 = vrot.slane %v1398_v59, 4  ;;  %v1387_v6 = vrot.slane %v1386_v2, 2 }
 0x354   :  { %v1342_v15 = vmul.f32 %v2029_v40, %v482_v25  ;;  %v1294_v7 = vpop.f32.mrb[25].mxu0  ;;  %v1392_v4 = vrot.slane %v1391_v44, 4  ;;  %v1380_v33 = vrot.slane %v1379_v42, 2  ;;  %v1368_v25 = vrot.slane %v1367_v31, 1 }
 0x355   :  { %v1341_v48 = vmul.f32 %v1294_v7, %v477_v12  ;;  %v1400_v38 = vadd.f32 %v1399_v30, %v1398_v59  ;;  %v1388_v1 = vadd.f32 %v1387_v6, %v1386_v2 }
 0x356   :  { %v1412_v35 = vsel %vm53_vm0, %v1342_v15, 0.0  ;;  %v1393_v18 = vadd.f32 %v1392_v4, %v1391_v44  ;;  %v1381_v15 = vadd.f32 %v1380_v33, %v1379_v42 }
 0x357   :  { %v1405_v21 = vsel %vm53_vm0, %v1341_v48, 0.0  ;;  %v1413_v24 = vrot.slane %v1412_v35, 4  ;;  %v1401_v52 = vrot.slane %v1400_v38, 2  ;;  %v1389_v30 = vrot.slane %v1388_v1, 1 }
 0x358   :  { %v1406_v46 = vrot.slane %v1405_v21, 4  ;;  %v1394_v3 = vrot.slane %v1393_v18, 2  ;;  %v1382_v2 = vrot.slane %v1381_v15, 1 }
 0x359   :  { %v1414_v63 = vadd.f32 %v1413_v24, %v1412_v35  ;;  %v1402_v59 = vadd.f32 %v1401_v52, %v1400_v38 }
 0x35a   :  { %v1407_v11 = vadd.f32 %v1406_v46, %v1405_v21  ;;  %v1395_v44 = vadd.f32 %v1394_v3, %v1393_v18  ;;  %v3185_v21 = vadd.f32 %v1368_v25, %v1367_v31 }
 0x35b   :  { %v1415_v49 = vrot.slane %v1414_v63, 2  ;;  %v1403_v46 = vrot.slane %v1402_v59, 1 }
 0x35c   :  { %v1408_v16 = vrot.slane %v1407_v11, 2  ;;  %v1396_v54 = vrot.slane %v1395_v44, 1 }
 0x35d   :  { %v2032_v34 = vpop.f32.mrb[26].mxu0  ;;  %v1416_v35 = vadd.f32 %v1415_v49, %v1414_v63  ;;  %v3196_v6 = vadd.f32 %v1403_v46, %v1402_v59 }
 0x35e   :  { %v1344_v51 = vmul.f32 %v2032_v34, %v492_v41  ;;  %v1304_v22 = vpop.f32.mrb[27].mxu0  ;;  %v1409_v4 = vadd.f32 %v1408_v16, %v1407_v11  ;;  %v3198_v11 = vadd.f32 %v1396_v54, %v1395_v44 }
 0x35f   :  { %v1343_v29 = vmul.f32 %v1304_v22, %v487_v58  ;;  %v1417_v26 = vrot.slane %v1416_v35, 1 }
 0x360   :  { %v1426_v17 = vsel %vm53_vm0, %v1344_v51, 0.0  ;;  %v3191_v51 = vadd.f32 %v1382_v2, %v1381_v15 }
 0x361   :  { %v1427_v13 = vrot.slane %v1426_v17, 4  ;;  %v1419_v36 = vsel %vm53_vm0, %v1343_v29, 0.0  ;;  %v1418_v33 = vadd.f32 %v1417_v26, %v1416_v35 }
 0x362   :  { %v1420_v12 = vrot.slane %v1419_v36, 4  ;;  %v2035_v50 = vpop.f32.mrb[28].mxu0 }
 0x363   :  { %v1428_v37 = vadd.f32 %v1427_v13, %v1426_v17  ;;  %v1346_v40 = vmul.f32 %v2035_v50, %v502_v43  ;;  %v1314_v57 = vpop.f32.mrb[29].mxu0 }
 0x364   :  { %v1421_v7 = vadd.f32 %v1420_v12, %v1419_v36  ;;  %v1345_v62 = vmul.f32 %v1314_v57, %v497_v55  ;;  %v1410_v55 = vrot.slane %v1409_v4, 1 }
 0x365   :  { %v1429_v48 = vrot.slane %v1428_v37, 2  ;;  %v1440_v20 = vsel %vm53_vm0, %v1346_v40, 0.0 }
 0x366   :  { %v1422_v45 = vrot.slane %v1421_v7, 2  ;;  %v1441_v61 = vrot.slane %v1440_v20, 4  ;;  %v1433_v9 = vsel %vm53_vm0, %v1345_v62, 0.0  ;;  %v2038_v28 = vpop.f32.mrb[30].mxu0  ;;  %v1411_v17 = vadd.f32 %v1410_v55, %v1409_v4 }
 0x367   :  { %v1434_v32 = vrot.slane %v1433_v9, 4  ;;  %v1430_v24 = vadd.f32 %v1429_v48, %v1428_v37  ;;  %v1348_v14 = vmul.f32 %v2038_v28, %v512_v56  ;;  %v1324_v58 = vpop.f32.mrb[31].mxu0  ;;  %v3189_v56 = vadd.f32 %v1389_v30, %v1388_v1 }
 0x368   :  { %v1423_v19 = vadd.f32 %v1422_v45, %v1421_v7  ;;  %v1442_v41 = vadd.f32 %v1441_v61, %v1440_v20  ;;  %v1347_v43 = vmul.f32 %v1324_v58, %v507_v27  ;;  %v1804_v27 = vld [vmem:[%s3239_s8] ss:$0 sm:$0xff] }
 0x369   :  { %v1435_v10 = vadd.f32 %v1434_v32, %v1433_v9  ;;  %v1454_v5 = vsel %vm53_vm0, %v1348_v14, 0.0  ;;  %v1431_v34 = vrot.slane %v1430_v24, 1 }
 0x36a   :  { %v1443_v42 = vrot.slane %v1442_v41, 2  ;;  %v1455_v38 = vrot.slane %v1454_v5, 4  ;;  %v1447_v18 = vsel %vm53_vm0, %v1347_v43, 0.0  ;;  %v1424_v60 = vrot.slane %v1423_v19, 1 }
 0x36b   :  { %v1436_v0 = vrot.slane %v1435_v10, 2  ;;  %v1448_v63 = vrot.slane %v1447_v18, 4  ;;  %v1432_v36 = vadd.f32 %v1431_v34, %v1430_v24 }
 0x36c   :  { %v1444_v31 = vadd.f32 %v1443_v42, %v1442_v41  ;;  %v1456_v8 = vadd.f32 %v1455_v38, %v1454_v5  ;;  %v1425_v25 = vadd.f32 %v1424_v60, %v1423_v19 }
 0x36d   :  { %v1437_v22 = vadd.f32 %v1436_v0, %v1435_v10  ;;  %v1449_v47 = vadd.f32 %v1448_v63, %v1447_v18 }
 0x36e   :  { %v1445_v29 = vrot.slane %v1444_v31, 1  ;;  %v1457_v3 = vrot.slane %v1456_v8, 2  ;;  %v2073_v13 = vpop.f32.mrb[16].mxu1 }
 0x36f   :  { %v1438_v52 = vrot.slane %v1437_v22, 1  ;;  %v1450_v49 = vrot.slane %v1449_v47, 2  ;;  %v1660_v12 = vmul.f32 %v2073_v13, %v1804_v27  ;;  %v1643_v50 = vpop.f32.mrb[17].mxu1 }
 0x370   :  { %v1446_v1 = vadd.f32 %v1445_v29, %v1444_v31  ;;  %v1458_v37 = vadd.f32 %v1457_v3, %v1456_v8  ;;  %v1659_v40 = vmul.f32 %v1804_v27, %v1643_v50 }
 0x371   :  { %v1439_v16 = vadd.f32 %v1438_v52, %v1437_v22  ;;  %v1451_v57 = vadd.f32 %v1450_v49, %v1449_v47  ;;  %v1670_v15 = vrot.slane %v1660_v12, 1  ;;  %v1671_v7 = vrot.slane %v1660_v12, 2 }
 0x372   :  { %v1672_v62 = vrot.slane %v1660_v12, 3  ;;  %v1459_v59 = vrot.slane %v1458_v37, 1  ;;  %v1673_v44 = vrot.slane %v1660_v12, 4  ;;  %v1674_v48 = vrot.slane %v1660_v12, 5 }
 0x373   :  { %v1675_v20 = vrot.slane %v1660_v12, 6  ;;  %v1452_v35 = vrot.slane %v1451_v57, 1  ;;  %v1676_v45 = vrot.slane %v1660_v12, 7  ;;  %v1701_v61 = vadd.f32 %v1660_v12, %v1411_v17 }
 0x374   :  { %v1702_v9 = vadd.f32 %v1670_v15, %v1418_v33  ;;  %v1460_v30 = vadd.f32 %v1459_v59, %v1458_v37  ;;  %v1703_v4 = vadd.f32 %v1671_v7, %v1425_v25  ;;  %v1704_v32 = vadd.f32 %v1672_v62, %v1432_v36 }
 0x375   :  { %v1705_v28 = vadd.f32 %v1673_v44, %v1439_v16  ;;  %v1453_v24 = vadd.f32 %v1452_v35, %v1451_v57  ;;  %v1706_v19 = vadd.f32 %v1674_v48, %v1446_v1  ;;  %v1663_v14 = vrot.slane %v1659_v40, 1 }
 0x376   :  { %v1746_v41 = vrot.slane %v1702_v9, 7  ;;  %v1708_v58 = vadd.f32 %v1676_v45, %v1460_v30  ;;  %v1748_v2 = vrot.slane %v1703_v4, 6  ;;  %v1750_v46 = vrot.slane %v1704_v32, 5 }
 0x377   :  { %v1752_v10 = vrot.slane %v1705_v28, 4  ;;  %v1707_v43 = vadd.f32 %v1675_v20, %v1453_v24  ;;  %v1754_v26 = vrot.slane %v1706_v19, 3  ;;  %v1664_v42 = vrot.slane %v1659_v40, 2 }
 0x378   :  { %v1747_v54 = vsel %vm1726_vm1, %v1746_v41, %v1701_v61  ;;  %v1758_v55 = vrot.slane %v1708_v58, 1  ;;  %v1665_v0 = vrot.slane %v1659_v40, 3  ;;  %v1666_v38 = vrot.slane %v1659_v40, 4 }
 0x379   :  { %v1749_v5 = vsel %vm1729_vm2, %v1748_v2, %v1747_v54  ;;  %v1756_v34 = vrot.slane %v1707_v43, 2  ;;  %v1667_v60 = vrot.slane %v1659_v40, 5  ;;  %v1668_v31 = vrot.slane %v1659_v40, 6 }
 0x37a   :  { %v1751_v18 = vsel %vm1732_vm3, %v1750_v46, %v1749_v5  ;;  %v1669_v22 = vrot.slane %v1659_v40, 7  ;;  %v1693_v8 = vadd.f32 %v1659_v40, %v3179_v39  ;;  %v1694_v27 = vadd.f32 %v1663_v14, %v3175_v23 }
 0x37b   :  { %v1753_v63 = vsel %vm1735_vm4, %v1752_v10, %v1751_v18  ;;  %v1695_v47 = vadd.f32 %v1664_v42, %v3185_v21  ;;  %v1696_v33 = vadd.f32 %v1665_v0, %v3181_v53  ;;  %v1697_v17 = vadd.f32 %v1666_v38, %v3191_v51 }
 0x37c   :  { %v1755_v29 = vsel %vm1738_vm5, %v1754_v26, %v1753_v63  ;;  %v1698_v3 = vadd.f32 %v1667_v60, %v3189_v56  ;;  %v1699_v13 = vadd.f32 %v1668_v31, %v3198_v11  ;;  %v1700_v36 = vadd.f32 %v1669_v22, %v3196_v6 }
 0x37d   :  { %v1757_v52 = vsel %vm1741_vm6, %v1756_v34, %v1755_v29  ;;  %v1725_v25 = vrot.slane %v1694_v27, 7  ;;  %v1728_v23 = vrot.slane %v1695_v47, 6  ;;  %v1731_v21 = vrot.slane %v1696_v33, 5 }
 0x37e   :  { %v1759_v39 = vsel %vm1744_vm7, %v1758_v55, %v1757_v52  ;;  %v1734_v49 = vrot.slane %v1697_v17, 4  ;;  %v1737_v11 = vrot.slane %v1698_v3, 3  ;;  %v1740_v12 = vrot.slane %v1699_v13, 2 }
 0x37f   :  { %1763 = vst.msk [vmem:[%s3240_s10 + $0x8] sm:$0xff] %vm53_vm0, %v1759_v39  ;;  %v1727_v53 = vsel %vm1726_vm1, %v1725_v25, %v1693_v8  ;;  %v1743_v1 = vrot.slane %v1700_v36, 1 }
 0x380   :  { %v1730_v51 = vsel %vm1729_vm2, %v1728_v23, %v1727_v53 }
 0x381   :  { %v1733_v56 = vsel %vm1732_vm3, %v1731_v21, %v1730_v51 }
 0x382   :  { %v1736_v6 = vsel %vm1735_vm4, %v1734_v49, %v1733_v56 }
 0x383   :  { %v1739_v50 = vsel %vm1738_vm5, %v1737_v11, %v1736_v6 }
 0x384   :  { %v1742_v16 = vsel %vm1741_vm6, %v1740_v12, %v1739_v50 }
 0x385   :  { %v1745_v37 = vsel %vm1744_vm7, %v1743_v1, %v1742_v16 }
 0x386   :  { %1762 = vst.msk [vmem:[%s3240_s10] sm:$0xff] %vm53_vm0, %v1745_v37 }

// kernel: ca_pooling.3
= control target key start
LH: loop header
LB: loop body
LE: loop exit
PB: predicated region body
PF: predicated region fallthrough
CT: control target
= control target key end

     0   :  { %vm65_vm0 = vcmask 523264   ;;  %s1056_s0 = inlined_call_operand.vmem [shape: f32[16,64], index: 0, kind: input, shape index: {}]   ;;  %s1057_s1 = inlined_call_operand.vmem [shape: f32[1,64], index: 1, kind: input, shape index: {}]   ;;  %s1058_s2 = inlined_call_operand.vmem [shape: f32[64,64], index: 2, kind: input, shape index: {}]   ;;  %s1059_s3 = inlined_call_operand.vmem [shape: f32[1,64], index: 3, kind: input, shape index: {}]   ;;  %s1060_s4 = inlined_call_operand.vmem [shape: f32[1,64], index: 4, kind: input, shape index: {}]   ;;  %s1061_s5 = inlined_call_operand.vmem [shape: f32[1,64], index: 5, kind: input, shape index: {}]   ;;  %s1062_s6 = inlined_call_operand.vmem [shape: f32[1,64], index: 6, kind: input, shape index: {}]   ;;  %s1063_s7 = inlined_call_operand.vmem [shape: f32[64,256], index: 7, kind: input, shape index: {}]   ;;  %s1064_s8 = inlined_call_operand.vmem [shape: f32[1,256], index: 8, kind: input, shape index: {}]   ;;  %s1065_s9 = inlined_call_operand.vmem [shape: f32[256,64], index: 9, kind: input, shape index: {}]   ;;  %s1066_s10 = inlined_call_operand.vmem [shape: f32[1,64], index: 10, kind: input, shape index: {}]   ;;  %s1067_s11 = inlined_call_operand.vmem [shape: f32[1,64], index: 11, kind: input, shape index: {}]   ;;  %s1068_s12 = inlined_call_operand.vmem [shape: f32[1,64], index: 12, kind: input, shape index: {}]   ;;  %s1069_s13 = inlined_call_operand.vmem [shape: f32[1,64], index: 13, kind: input, shape index: {}]   ;;  %s1070_s14 = inlined_call_operand.hbm [shape: f32[16,64], index: 14, kind: output, shape index: {}]  }
   0x1   :  { %v50_v0 = vld [vmem:[%s1058_s2] sm:$0xff]  ;;  %v51_v1 = vld [vmem:[%s1058_s2 + $0x8] sm:$0xff]  ;;  %v52_v2 = vld [vmem:[%s1058_s2 + $0x10] sm:$0xff] }
   0x2   :  { %v624_v3 = vpack.c.bf16 %v51_v1, %v50_v0  ;;  %v53_v4 = vld [vmem:[%s1058_s2 + $0x18] sm:$0xff]  ;;  %v54_v6 = vld [vmem:[%s1058_s2 + $0x20] sm:$0xff]  ;;  %v55_v7 = vld [vmem:[%s1058_s2 + $0x28] sm:$0xff] }
   0x3   :  { %v628_v5 = vpack.c.bf16 %v53_v4, %v52_v2  ;;  %v48_v8 = vld [vmem:[%s1056_s0] sm:$0xff] }
   0x4   :  { %625 = vmatprep.subr.bf16.mxu1 %v624_v3  ;;  %621 = vmatprep.mubr.msk.f32.mxu1 %vm65_vm0, %v48_v8 }
   0x5   :  { %19 = vsyncpa [#allocation3], 0  ;;  %627 = vmatpush3.bf16.msra.mxu1 %v624_v3  ;;  %v632_v9 = vpack.c.bf16 %v55_v7, %v54_v6  ;;  %v56_v10 = vld [vmem:[%s1058_s2 + $0x30] sm:$0xff]  ;;  %v57_v11 = vld [vmem:[%s1058_s2 + $0x38] sm:$0xff]  ;;  %v732_v61 = vmov 0.0   ;;  %s733_s15 = smov [#allocation2]  }
   0x6   :  { %629 = vmatprep.subr.bf16.mxu1 %v628_v5  ;;  %v636_v12 = vpack.c.bf16 %v57_v11, %v56_v10  ;;  %v49_v13 = vld [vmem:[%s1056_s0 + $0x8] sm:$0xff]  ;;  %v544_v14 = vld [vmem:[%s1059_s3] ss:$0 sm:$0xff]  ;;  %v213_v38 = vld [vmem:[%s1063_s7 + $0x18] sm:$0xff]  ;;  %s533_s16 = sshll.u32 %s733_s15, 4  ;;  %s534_s16 = int_to_ptr.vmem [resolvable:$true] %s533_s16 }
   0x7   :  { %v547_v17 = vld [vmem:[%s1060_s4] ss:$0 sm:$0xff]  ;;  %v211_v37 = vld [vmem:[%s1063_s7 + $0x8] sm:$0xff]  ;;  %v212_v41 = vld [vmem:[%s1063_s7 + $0x10] sm:$0xff]  ;;  %s708_s17 = scalar_lea.vmem %s534_s16, 256  ;;  %p713_p1 = scmp.lt.s32.totalorder %s534_s16, %s534_s16 }
   0x8   :  { %v548_v20 = vld [vmem:[%s1057_s1] ss:$0 sm:$0xff]  ;;  %v640_v39 = vpack.c.bf16 %v213_v38, %v211_v37  ;;  %v215_v43 = vld [vmem:[%s1063_s7 + $0x28] sm:$0xff]  ;;  %v217_v44 = vld [vmem:[%s1063_s7 + $0x38] sm:$0xff]  ;;  %p709_p0 = scmp.ne.s32.totalorder %s534_s16, %s708_s17  ;;  %p714_p2 = scmp.lt.s32.totalorder %s708_s17, %s708_s17 }
   0x9   :  { %631 = vmatpush3.bf16.msra.mxu1 %v628_v5  ;;  %v210_v40 = vld [vmem:[%s1063_s7] sm:$0xff]  ;;  %v644_v45 = vpack.c.bf16 %v217_v44, %v215_v43  ;;  %v216_v47 = vld [vmem:[%s1063_s7 + $0x30] sm:$0xff]  ;;  %v219_v49 = vld [vmem:[%s1063_s7 + $0x48] sm:$0xff] }
   0xa   :  { %633 = vmatprep.subr.bf16.mxu1 %v632_v9  ;;  %v642_v42 = vpack.c.bf16 %v212_v41, %v210_v40  ;;  %v214_v46 = vld [vmem:[%s1063_s7 + $0x20] sm:$0xff]  ;;  %v221_v50 = vld [vmem:[%s1063_s7 + $0x58] sm:$0xff]  ;;  %v220_v53 = vld [vmem:[%s1063_s7 + $0x50] sm:$0xff]  ;;  %p715_p3 = por %p714_p2, %p713_p1 }
   0xb   :  { %v646_v48 = vpack.c.bf16 %v216_v47, %v214_v46  ;;  %v648_v51 = vpack.c.bf16 %v221_v50, %v219_v49  ;;  %v218_v52 = vld [vmem:[%s1063_s7 + $0x40] sm:$0xff]  ;;  %v223_v55 = vld [vmem:[%s1063_s7 + $0x68] sm:$0xff]  ;;  %v225_v56 = vld [vmem:[%s1063_s7 + $0x78] sm:$0xff] }
   0xc   :  { %v650_v54 = vpack.c.bf16 %v220_v53, %v218_v52  ;;  %v652_v57 = vpack.c.bf16 %v225_v56, %v223_v55  ;;  %v222_v58 = vld [vmem:[%s1063_s7 + $0x60] sm:$0xff]  ;;  %v224_v59 = vld [vmem:[%s1063_s7 + $0x70] sm:$0xff]  ;;  %v374_v63 = vld [vmem:[%s1065_s9 + $0x88] sm:$0xff]  ;;  %p716_p4 = pnand %p715_p3, %p709_p0 }
   0xd   :  { %635 = vmatpush3.bf16.msra.mxu1 %v632_v9  ;;  %v654_v60 = vpack.c.bf16 %v224_v59, %v222_v58  ;;  %v373_v62 = vld [vmem:[%s1065_s9 + $0x80] sm:$0xff]  ;;  %v358_v2 = vld [vmem:[%s1065_s9 + $0x8] sm:$0xff]  ;;  %v363_v37 = vld [vmem:[%s1065_s9 + $0x30] sm:$0xff] }
   0xe   :  { %637 = vmatprep.subr.bf16.mxu1 %v636_v12  ;;  %v357_v0 = vld [vmem:[%s1065_s9] sm:$0xff]  ;;  %v656_v1 = vpack.c.bf16 %v374_v63, %v373_v62  ;;  %v364_v38 = vld [vmem:[%s1065_s9 + $0x38] sm:$0xff]  ;;  %v382_v41 = vld [vmem:[%s1065_s9 + $0xc8] sm:$0xff] }
   0xf   :  { %v658_v3 = vpack.c.bf16 %v358_v2, %v357_v0  ;;  %v549_v11 = vld [vmem:[%s1061_s5] ss:$0 sm:$0xff]  ;;  %v366_v44 = vld [vmem:[%s1065_s9 + $0x48] sm:$0xff]  ;;  %v384_v46 = vld [vmem:[%s1065_s9 + $0xd8] sm:$0xff]  ;;  %v228_v0 = vlaneseq }
  0x10   :  { %657 = vmatprep.subr.bf16.mxu0 %v656_v1  ;;  %v381_v40 = vld [vmem:[%s1065_s9 + $0xc0] sm:$0xff]  ;;  %v367_v49 = vld [vmem:[%s1065_s9 + $0x50] sm:$0xff]  ;;  %v368_v50 = vld [vmem:[%s1065_s9 + $0x58] sm:$0xff] }
  0x11   :  { %639 = vmatpush3.bf16.msra.mxu1 %v636_v12  ;;  %659 = vmatpush3.bf16.msra.mxu0 %v658_v3  ;;  %v672_v43 = vpack.c.bf16 %v382_v41, %v381_v40  ;;  %v386_v52 = vld [vmem:[%s1065_s9 + $0xe8] sm:$0xff]  ;;  %v678_v53 = vpack.c.bf16 %v368_v50, %v367_v49  ;;  %v369_v55 = vld [vmem:[%s1065_s9 + $0x60] sm:$0xff]  ;;  %v388_v58 = vld [vmem:[%s1065_s9 + $0xf8] sm:$0xff]  ;;  %v229_v1 = vshrl.u32 %v228_v0, 7 }
  0x12   :  { %641 = vmatprep.subr.bf16.mxu1 %v640_v39  ;;  %v670_v39 = vpack.c.bf16 %v364_v38, %v363_v37  ;;  %v370_v56 = vld [vmem:[%s1065_s9 + $0x68] sm:$0xff]  ;;  %v372_v62 = vld [vmem:[%s1065_s9 + $0x78] sm:$0xff]  ;;  %v226_v3 = vld [vmem:[%s1064_s8] sm:$0x3] }
  0x13   :  { %v682_v59 = vpack.c.bf16 %v370_v56, %v369_v55  ;;  %v230_v2 = vsub.s32 0, %v229_v1 }
  0x14   :  { %622 = vmatmul.mubr.msk.f32.vlgmr.msra.gmra.mrb[0].mxu1 %vm65_vm0, %v49_v13  ;;  %v550_v13 = vld [vmem:[%s1062_s6] ss:$0 sm:$0xff] }
  0x15   :  { %643 = vmatpush1.bf16.msra.mxu1 %v642_v42  ;;  %308 = vmatprep.mubr.f32.mxu1 %v732_v61  ;;  %v365_v42 = vld [vmem:[%s1065_s9 + $0x40] sm:$0xff] }
  0x16   :  { %645 = vmatprep.subr.bf16.mxu1 %v644_v45  ;;  %v383_v45 = vld [vmem:[%s1065_s9 + $0xd0] sm:$0xff]  ;;  %v674_v47 = vpack.c.bf16 %v366_v44, %v365_v42 }
  0x19   :  { %647 = vmatpush1.bf16.msra.mxu1 %v646_v48  ;;  %v676_v48 = vpack.c.bf16 %v384_v46, %v383_v45 }
  0x1a   :  { %649 = vmatprep.subr.bf16.mxu1 %v648_v51  ;;  %v385_v51 = vld [vmem:[%s1065_s9 + $0xe0] sm:$0xff] }
  0x1d   :  { %651 = vmatpush1.bf16.msra.mxu1 %v650_v54  ;;  %v680_v54 = vpack.c.bf16 %v386_v52, %v385_v51 }
  0x1e   :  { %653 = vmatprep.subr.bf16.mxu1 %v652_v57  ;;  %v387_v57 = vld [vmem:[%s1065_s9 + $0xf0] sm:$0xff] }
  0x21   :  { %655 = vmatpush1.bf16.msra.mxu1 %v654_v60  ;;  %v684_v60 = vpack.c.bf16 %v388_v58, %v387_v57  ;;  %v554_v57 = vld [vmem:[%s1067_s11] ss:$0 sm:$0xff] }
  0xe7   :  { %v623_v15 = vpop.f32.mrb[0].mxu1 }
  0xe8   :  { %v144_v16 = vadd.f32 %v623_v15, %v544_v14  ;;  %v138_v18 = vpop.f32.mrb[1].mxu1 }
  0xe9   :  { %v139_v19 = vadd.f32 %v544_v14, %v138_v18 }
  0xea   :  { %v156_v21 = vmul.f32 %v547_v17, %v144_v16 }
  0xeb   :  { %v155_v22 = vmul.f32 %v547_v17, %v139_v19 }
  0xec   :  { %v854_v24 = vadd.f32 %v548_v20, %v156_v21  ;;  %v376_v21 = vld [vmem:[%s1065_s9 + $0x98] sm:$0xff] }
  0xed   :  { %v852_v23 = vadd.f32 %v548_v20, %v155_v22  ;;  %v375_v20 = vld [vmem:[%s1065_s9 + $0x90] sm:$0xff] }
  0xee   :  { %v170_v26 = vsel %vm65_vm0, %v854_v24, 0.0  ;;  %v660_v22 = vpack.c.bf16 %v376_v21, %v375_v20 }
  0xef   :  { %v167_v25 = vsel %vm65_vm0, %v852_v23, 0.0 }
  0xf0   :  { %168 = vadd.xlane.f32.xlu0 %v167_v25  ;;  %v359_v25 = vld [vmem:[%s1065_s9 + $0x10] sm:$0xff]  ;;  %661 = vmatprep.subr.bf16.mxu0 %v660_v22 }
  0xf4   :  { %171 = vadd.xlane.f32.xlu0 %v170_v26  ;;  %v360_v26 = vld [vmem:[%s1065_s9 + $0x18] sm:$0xff] }
 0x17d   :  { %v169_v27 = vpop.xlane.xlu0 %168 }
 0x17e   :  { %v174_v28 = vmul.f32 0.015625, %v169_v27  ;;  %v662_v27 = vpack.c.bf16 %v360_v26, %v359_v25 }
 0x180   :  { %v176_v29 = vsub.f32 %v852_v23, %v174_v28  ;;  %663 = vmatpush3.bf16.msra.mxu0 %v662_v27  ;;  %v377_v28 = vld [vmem:[%s1065_s9 + $0xa0] sm:$0xff] }
 0x181   :  { %v172_v30 = vpop.xlane.xlu0 %171 }
 0x182   :  { %v175_v31 = vmul.f32 0.015625, %v172_v30  ;;  %v178_v32 = vmul.f32 %v176_v29, %v176_v29 }
 0x184   :  { %v862_v33 = vsub.f32 %v854_v24, %v175_v31  ;;  %v180_v34 = vsel %vm65_vm0, %v178_v32, 0.0  ;;  %v361_v31 = vld [vmem:[%s1065_s9 + $0x20] sm:$0xff]  ;;  %v362_v32 = vld [vmem:[%s1065_s9 + $0x28] sm:$0xff] }
 0x185   :  { %181 = vadd.xlane.f32.xlu1 %v180_v34  ;;  %v379_v34 = vld [vmem:[%s1065_s9 + $0xb0] sm:$0xff] }
 0x186   :  { %v179_v35 = vmul.f32 %v862_v33, %v862_v33 }
 0x188   :  { %v183_v36 = vsel %vm65_vm0, %v179_v35, 0.0  ;;  %v380_v35 = vld [vmem:[%s1065_s9 + $0xb8] sm:$0xff] }
 0x189   :  { %184 = vadd.xlane.f32.xlu1 %v183_v36  ;;  %v668_v36 = vpack.c.bf16 %v380_v35, %v379_v34 }
 0x212   :  { %v182_v4 = vpop.xlane.xlu1 %181 }
 0x213   :  { %v186_v5 = vmul.f32 0.015625, %v182_v4  ;;  %v234_v4 = vsub.s32 1, %v229_v1 }
 0x215   :  { %v188_v6 = vadd.f32 1e-06, %v186_v5  ;;  %v231_v5 = vrot.slane %v226_v3, %v230_v2 }
 0x216   :  { %v185_v7 = vpop.xlane.xlu1 %184 }
 0x217   :  { %692 = vrsqrt.f32 %v188_v6  ;;  %v187_v8 = vmul.f32 0.015625, %v185_v7  ;;  %v235_v6 = vrot.slane %v226_v3, %v234_v4 }
 0x219   :  { %v189_v9 = vadd.f32 1e-06, %v187_v8 }
 0x21b   :  { %694 = vrsqrt.f32 %v189_v9 }
 0x221   :  { %v693_v10 = vpop.eup %692 }
 0x222   :  { %v192_v12 = vmul.f32 %v693_v10, %v176_v29  ;;  %v378_v29 = vld [vmem:[%s1065_s9 + $0xa8] sm:$0xff] }
 0x223   :  { %v664_v30 = vpack.c.bf16 %v378_v29, %v377_v28 }
 0x224   :  { %v200_v14 = vmul.f32 %v549_v11, %v192_v12 }
 0x225   :  { %v695_v15 = vpop.eup %694  ;;  %665 = vmatprep.subr.bf16.mxu0 %v664_v30 }
 0x226   :  { %v208_v16 = vadd.f32 %v550_v13, %v200_v14  ;;  %v193_v17 = vmul.f32 %v695_v15, %v862_v33  ;;  %v666_v33 = vpack.c.bf16 %v362_v32, %v361_v31 }
 0x228   :  { %551 = vmatmul.mubr.msk.f32.vlgmr.msra.gmra.mrb[2].mxu1 %vm65_vm0, %v208_v16  ;;  %v201_v18 = vmul.f32 %v549_v11, %v193_v17  ;;  %667 = vmatpush3.bf16.msra.mxu0 %v666_v33 }
 0x229   :  { %314 = vmatprep.mubr.f32.mxu1 %v732_v61  ;;  %669 = vmatprep.subr.bf16.mxu0 %v668_v36  ;;  %v371_v61 = vld [vmem:[%s1065_s9 + $0x70] sm:$0xff] }
 0x22a   :  { %v209_v19 = vadd.f32 %v550_v13, %v201_v18  ;;  %v686_v63 = vpack.c.bf16 %v372_v62, %v371_v61 }
 0x22c   :  { %552 = vmatmul.mubr.msk.f32.gmra.mrb[4].mxu1 %vm65_vm0, %v209_v19  ;;  %671 = vmatpush3.bf16.msra.mxu0 %v670_v39 }
 0x22d   :  { %673 = vmatprep.subr.bf16.mxu0 %v672_v43 }
 0x230   :  { %675 = vmatpush3.bf16.msra.mxu0 %v674_v47 }
 0x231   :  { %677 = vmatprep.subr.bf16.mxu0 %v676_v48 }
 0x234   :  { %679 = vmatpush3.bf16.msra.mxu0 %v678_v53 }
 0x235   :  { %681 = vmatprep.subr.bf16.mxu0 %v680_v54  ;;  %v553_v54 = vld [vmem:[%s1066_s10] ss:$0 sm:$0xff] }
 0x238   :  { %683 = vmatpush3.bf16.msra.mxu0 %v682_v59 }
 0x239   :  { %685 = vmatprep.subr.bf16.mxu0 %v684_v60 }
 0x23c   :  { %687 = vmatpush3.bf16.msra.mxu0 %v686_v63 }
 0x2fb   :  { %v310_v7 = vpop.f32.mrb[2].mxu1 }
 0x2fc   :  { %v311_v8 = vadd.f32 %v310_v7, %v231_v5  ;;  %v312_v9 = vpop.f32.mrb[3].mxu1 }
 0x2fd   :  { %v313_v10 = vadd.f32 %v312_v9, %v235_v6 }
 0x2fe   :  { %v325_v11 = vmul.f32 0.044715, %v311_v8  ;;  %v321_v42 = vmul.f32 0.5, %v311_v8 }
 0x2ff   :  { %v316_v12 = vpop.f32.mrb[4].mxu1  ;;  %v326_v13 = vmul.f32 0.044715, %v313_v10  ;;  %v322_v40 = vmul.f32 0.5, %v313_v10 }
 0x300   :  { %v329_v14 = vmul.f32 %v325_v11, %v311_v8  ;;  %v317_v15 = vadd.f32 %v316_v12, %v231_v5  ;;  %v318_v16 = vpop.f32.mrb[5].mxu1 }
 0x301   :  { %v319_v17 = vadd.f32 %v318_v16, %v235_v6  ;;  %v330_v18 = vmul.f32 %v326_v13, %v313_v10 }
 0x302   :  { %v327_v19 = vmul.f32 0.044715, %v317_v15  ;;  %v333_v20 = vmul.f32 %v329_v14, %v311_v8  ;;  %v323_v50 = vmul.f32 0.5, %v317_v15 }
 0x303   :  { %v328_v21 = vmul.f32 0.044715, %v319_v17  ;;  %v334_v22 = vmul.f32 %v330_v18, %v313_v10  ;;  %v324_v48 = vmul.f32 0.5, %v319_v17 }
 0x304   :  { %v331_v25 = vmul.f32 %v327_v19, %v317_v15  ;;  %v337_v26 = vadd.f32 %v333_v20, %v311_v8  ;;  %v555_v20 = vld [vmem:[%s1068_s12] ss:$0 sm:$0xff] }
 0x305   :  { %v332_v27 = vmul.f32 %v328_v21, %v319_v17  ;;  %v338_v28 = vadd.f32 %v334_v22, %v313_v10  ;;  %v556_v22 = vld [vmem:[%s1069_s13] ss:$0 sm:$0xff] }
 0x306   :  { %v341_v29 = vmul.f32 0.7978846, %v337_v26  ;;  %v335_v30 = vmul.f32 %v331_v25, %v317_v15 }
 0x307   :  { %v342_v31 = vmul.f32 0.7978846, %v338_v28  ;;  %v336_v32 = vmul.f32 %v332_v27, %v319_v17 }
 0x308   :  { %696 = vtanh.f32 %v341_v29  ;;  %v339_v33 = vadd.f32 %v335_v30, %v317_v15 }
 0x309   :  { %698 = vtanh.f32 %v342_v31  ;;  %v340_v34 = vadd.f32 %v336_v32, %v319_v17 }
 0x30a   :  { %v343_v35 = vmul.f32 0.7978846, %v339_v33 }
 0x30b   :  { %v344_v36 = vmul.f32 0.7978846, %v340_v34 }
 0x30c   :  { %700 = vtanh.f32 %v343_v35 }
 0x30d   :  { %702 = vtanh.f32 %v344_v36 }
 0x312   :  { %v697_v37 = vpop.eup %696 }
 0x313   :  { %v699_v38 = vpop.eup %698  ;;  %v349_v39 = vadd.f32 1.0, %v697_v37 }
 0x314   :  { %v350_v41 = vadd.f32 1.0, %v699_v38 }
 0x315   :  { %v353_v46 = vmul.f32 %v349_v39, %v321_v42 }
 0x316   :  { %v701_v43 = vpop.eup %700  ;;  %v354_v44 = vmul.f32 %v350_v41, %v322_v40 }
 0x317   :  { %v703_v45 = vpop.eup %702  ;;  %v351_v47 = vadd.f32 1.0, %v701_v43 }
 0x318   :  { %460 = vmatprep.mubr.f32.mxu0 %v354_v44  ;;  %v352_v49 = vadd.f32 1.0, %v703_v45 }
 0x319   :  { %461 = vmatmul.mubr.f32.vlgmr.msra.gmra.mrb[0].mxu0 %v353_v46  ;;  %v355_v52 = vmul.f32 %v351_v47, %v323_v50 }
 0x31a   :  { %v356_v51 = vmul.f32 %v352_v49, %v324_v48 }
 0x31c   :  { %465 = vmatprep.mubr.f32.mxu0 %v356_v51 }
 0x31d   :  { %466 = vmatmul.mubr.f32.gmra.mrb[2].mxu0 %v355_v52 }
 0x3ec   :  { %v599_v53 = vpop.f32.mrb[0].mxu0 }
 0x3ed   :  { %v600_v55 = vpop.f32.mrb[1].mxu0 }
 0x3ee   :  { %v601_v56 = vadd.f32 %v600_v55, %v599_v53 }
 0x3f0   :  { %v463_v58 = vadd.f32 %v601_v56, %v553_v54  ;;  %v602_v59 = vpop.f32.mrb[2].mxu0 }
 0x3f1   :  { %v603_v60 = vpop.f32.mrb[3].mxu0 }
 0x3f2   :  { %v604_v61 = vadd.f32 %v603_v60, %v602_v59  ;;  %v478_v62 = vmul.f32 %v554_v57, %v463_v58 }
 0x3f4   :  { %v468_v63 = vadd.f32 %v604_v61, %v553_v54  ;;  %v480_v0 = vadd.f32 %v478_v62, %v852_v23 }
 0x3f6   :  { %v484_v1 = vsel %vm65_vm0, %v480_v0, 0.0  ;;  %v479_v2 = vmul.f32 %v554_v57, %v468_v63 }
 0x3f7   :  { %485 = vadd.xlane.f32.xlu0 %v484_v1 }
 0x3f8   :  { %v481_v3 = vadd.f32 %v479_v2, %v854_v24 }
 0x3fa   :  { %v487_v4 = vsel %vm65_vm0, %v481_v3, 0.0 }
 0x3fb   :  { %488 = vadd.xlane.f32.xlu1 %v487_v4 }
 0x484   :  { %v486_v5 = vpop.xlane.xlu0 %485 }
 0x485   :  { %v490_v6 = vmul.f32 0.015625, %v486_v5 }
 0x487   :  { %v492_v7 = vsub.f32 %v480_v0, %v490_v6 }
 0x488   :  { %v489_v8 = vpop.xlane.xlu1 %488 }
 0x489   :  { %v491_v9 = vmul.f32 0.015625, %v489_v8  ;;  %v494_v10 = vmul.f32 %v492_v7, %v492_v7 }
 0x48b   :  { %v493_v11 = vsub.f32 %v481_v3, %v491_v9  ;;  %v496_v12 = vsel %vm65_vm0, %v494_v10, 0.0 }
 0x48c   :  { %497 = vadd.xlane.f32.xlu0 %v496_v12 }
 0x48d   :  { %v495_v23 = vmul.f32 %v493_v11, %v493_v11 }
 0x48f   :  { %v499_v13 = vsel %vm65_vm0, %v495_v23, 0.0 }
 0x490   :  { %500 = vadd.xlane.f32.xlu1 %v499_v13 }
 0x519   :  { %v498_v14 = vpop.xlane.xlu0 %497 }
 0x51a   :  { %v502_v15 = vmul.f32 0.015625, %v498_v14 }
 0x51c   :  { %v504_v24 = vadd.f32 1e-05, %v502_v15 }
 0x51d   :  { %v501_v16 = vpop.xlane.xlu1 %500 }
 0x51e   :  { %704 = vrsqrt.f32 %v504_v24  ;;  %v503_v17 = vmul.f32 0.015625, %v501_v16 }
 0x520   :  { %v505_v18 = vadd.f32 1e-05, %v503_v17 }
 0x522   :  { %706 = vrsqrt.f32 %v505_v18 }
 0x528   :  { %v705_v19 = vpop.eup %704 }
 0x529   :  { %v508_v21 = vmul.f32 %v705_v19, %v492_v7 }
 0x52b   :  { %v516_v25 = vmul.f32 %v555_v20, %v508_v21 }
 0x52c   :  { %v707_v26 = vpop.eup %706 }
 0x52d   :  { %v509_v27 = vmul.f32 %v707_v26, %v493_v11  ;;  %v524_v28 = vadd.f32 %v556_v22, %v516_v25 }
 0x52f   :  { %v517_v29 = vmul.f32 %v555_v20, %v509_v27  ;;  %526 = vst.msk [vmem:[#allocation2] sm:$0xff] %vm65_vm0, %v524_v28 }
 0x531   :  { %v525_v30 = vadd.f32 %v556_v22, %v517_v29 }
 0x533   :  { %527 = vst.msk [vmem:[#allocation2 + $0x8] sm:$0xff] %vm65_vm0, %v525_v30 }
 0x534   :  { %719 = shalt.err (!%p716_p4)
}
 0x535   :  { %s720_s18 = scalar_lea.hbm %s1070_s14, 256 }
 0x536   :  { %p721_p5 = scmp.ne.s32.totalorder %s1070_s14, %s720_s18  ;;  %p724_p6 = scmp.lt.u32.totalorder %s720_s18, %s1070_s14 }
 0x538   :  { %p726_p7 = pnand %p724_p6, %p721_p5 }
 0x53a   :  { %729 = shalt.err (!%p726_p7)
}
 0x53b   :  { %s734_s21 = smov 128   ;;  %s735_s0 = smov 8  }
 0x53c   :  { %539 = dma.vmem_to_hbm [thread:$0]  %s534_s16, 256, %s1070_s14, [#allocation3], %s734_s21, %s734_s21, %s735_s0  }
 0x53d   :  { %730 = dma.done.wait [#allocation3], 256  }
 0x53e   :  { %731 = vsyncadd [#allocation3], 4294967040 }
 0x53f   :  { %543 = vsyncpa [#allocation3], 1 }

</bundles_post_ra>
